<compile_context>
chip_gen: v5e
topology: v5e:2x2
jax: 0.10.0
libtpu: 0.0.40
codegen_flags: <defaults>
</compile_context>

<pallas_src>
import functools

import jax
import jax.numpy as jnp
from jax.experimental import pallas as pl
from jax.experimental.pallas import tpu as pltpu


def _round_up(v, m):
    return -(-v // m) * m


def block_kernel(x_ref, w1_ref, b1_ref, w2_ref, b2_ref, o_ref, acc_ref, *,
                 compute_dtype):
    k = pl.program_id(1)

    @pl.when(k == 0)
    def _():
        acc_ref[...] = jnp.zeros_like(acc_ref)

    x = x_ref[...]
    xc = x if compute_dtype is None else x.astype(compute_dtype)
    w1 = w1_ref[...]
    if compute_dtype is not None:
        w1 = w1.astype(compute_dtype)
    # First matmul on the MXU, f32 accumulate; bias add + tanh in f32.
    h = jnp.dot(xc, w1, preferred_element_type=jnp.float32)
    h = jnp.tanh(h + b1_ref[...].astype(jnp.float32))

    w2 = w2_ref[...]
    if compute_dtype is not None:
        w2 = w2.astype(compute_dtype)
    # Second matmul in the weight dtype (native MXU path for bf16), accumulated
    # across width (K) tiles in the f32 scratch.
    acc_ref[...] += jnp.dot(h.astype(w2.dtype), w2,
                            preferred_element_type=jnp.float32)

    @pl.when(k == pl.num_programs(1) - 1)
    def _():
        y = jnp.tanh(acc_ref[...] + b2_ref[...].astype(jnp.float32))
        o_ref[...] = (y + x.astype(jnp.float32)).astype(o_ref.dtype)


def _pick_tile_b(B, dtype, target=512):
    """Batch tile: multiple of sublane packing, ~target rows, and >= 2 grid
    steps whenever possible (v7x has 2 TensorCores sharded over the parallel
    axis).  The caller pads B up to a multiple of the returned tile."""
    min_mult = 16 if jnp.dtype(dtype) == jnp.dtype(jnp.bfloat16) else 8
    if B <= min_mult:
        return min_mult
    if B <= 2 * target:
        return max(min_mult, _round_up(-(-B // 2), min_mult))
    return _round_up(target, min_mult)


def _pick_tile_w(width, in_N, out_N, itemsize, budget_bytes):
    """Width (K) tile: full width if the resident weights fit the budget,
    otherwise the largest 128-multiple whose per-step weight slab fits."""
    per_col = (in_N + out_N + 1) * itemsize
    if width * per_col <= budget_bytes:
        return width
    max_cols = max(128, (budget_bytes // per_col) // 128 * 128)
    for t in range(max_cols, 127, -128):   # prefer a divisor -> no width padding
        if width % t == 0:
            return t
    return max_cols


def block_forward(x, w1, b1, w2, b2, *, tile_b=None, tile_w=None,
                  compute_dtype=None, single_buffer_resident=True,
                  weight_vmem_budget=16 * 1024 * 1024, vmem_limit_bytes=None):
    """x: [B, in_N]; w1: [in_N, width]; b1: [width]; w2: [width, out_N]; b2: [out_N].
    Weights are stored pre-transposed relative to torch.nn.Linear.  out_N must
    equal in_N (residual)."""
    B, in_N = x.shape
    width = w1.shape[1]
    out_N = w2.shape[1]
    assert out_N == in_N, "residual requires out_N == in_N"

    x_itemsize = jnp.dtype(x.dtype).itemsize
    w_itemsize = jnp.dtype(w1.dtype).itemsize

    # ---- batch tiling; pad B instead of whole-batch fallback ----
    min_mult = 16 if jnp.dtype(x.dtype) == jnp.dtype(jnp.bfloat16) else 8
    if tile_b is None:
        tile_b = _pick_tile_b(B, x.dtype)
    tile_b = _round_up(tile_b, min_mult)
    B_p = _round_up(B, tile_b)
    x_in = jnp.pad(x, ((0, B_p - B), (0, 0))) if B_p != B else x

    # ---- width (K) tiling; pad width if the tile does not divide it ----
    if tile_w is None:
        tile_w = _pick_tile_w(width, in_N, out_N, w_itemsize, weight_vmem_budget)
    if tile_w >= width:
        tile_w = width
    else:
        tile_w = min(_round_up(tile_w, 128), width)
    width_p = _round_up(width, tile_w)
    if width_p != width:
        pad_w = width_p - width
        # Zero-padded hidden units contribute tanh(0)=0 and zero rows of w2.
        w1 = jnp.pad(w1, ((0, 0), (0, pad_w)))
        b1 = jnp.pad(b1, ((0, pad_w),))
        w2 = jnp.pad(w2, ((0, pad_w), (0, 0)))
    num_k = width_p // tile_w

    b1_2d = b1.reshape(1, width_p)
    b2_2d = b2.reshape(1, out_N)

    # ---- VMEM limit from the actual buffers (+headroom), not a blanket 64MiB ----
    weight_bufs = 1 if (single_buffer_resident and num_k == 1) else 2
    est = (weight_bufs * (in_N * tile_w + tile_w * out_N + tile_w + out_N) * w_itemsize
           + 2 * tile_b * (in_N + out_N) * x_itemsize      # double-buffered x / out tiles
           + tile_b * out_N * 4                            # f32 accumulator scratch
           + 2 * tile_b * max(tile_w, out_N) * 4)          # f32 h / epilogue temporaries
    if vmem_limit_bytes is None:
        vmem_limit_bytes = min(max(int(est * 1.25) + (4 << 20), 32 << 20), 100 << 20)

    cost = pl.CostEstimate(
        flops=2 * B_p * (in_N * width_p + width_p * out_N),
        transcendentals=B_p * (width_p + out_N),
        bytes_accessed=int(x_in.size * x_itemsize + B_p * out_N * x_itemsize
                           + (w1.size + b1.size + w2.size + b2.size) * w_itemsize),
    )

    grid = (B_p // tile_b, num_k)
    kernel = functools.partial(block_kernel, compute_dtype=compute_dtype)

    def _run(use_single_buffer):
        # Resident (constant-index) operands are only DMA'd once; when they are
        # constant across the whole grid, a single VMEM buffer suffices.
        resident = (dict(pipeline_mode=pl.Buffered(1))
                    if (use_single_buffer and num_k == 1) else {})
        return pl.pallas_call(
            kernel,
            out_shape=jax.ShapeDtypeStruct((B_p, out_N), x.dtype),
            grid_spec=pltpu.PrefetchScalarGridSpec(
                num_scalar_prefetch=0,
                grid=grid,
                in_specs=[
                    # x tile: streamed over batch, revisited (not re-DMA'd) over K.
                    pl.BlockSpec((tile_b, in_N), lambda i, k: (i, 0)),
                    # Weight / bias slabs: K-tiled, constant across the batch axis.
                    pl.BlockSpec((in_N, tile_w), lambda i, k: (0, k), **resident),
                    pl.BlockSpec((1, tile_w), lambda i, k: (0, k), **resident),
                    pl.BlockSpec((tile_w, out_N), lambda i, k: (k, 0), **resident),
                    pl.BlockSpec((1, out_N), lambda i, k: (0, 0), **resident),
                ],
                out_specs=pl.BlockSpec((tile_b, out_N), lambda i, k: (i, 0)),
                scratch_shapes=[pltpu.VMEM((tile_b, out_N), jnp.float32)],
            ),
            compiler_params=pltpu.CompilerParams(
                dimension_semantics=("parallel", "arbitrary"),
                vmem_limit_bytes=vmem_limit_bytes,
            ),
            cost_estimate=cost,
        )(x_in, w1, b1_2d, w2, b2_2d)

    if single_buffer_resident and num_k == 1:
        try:
            out = _run(True)
        except Exception:
            # Some JAX versions reject Buffered(1); fall back to default buffering.
            out = _run(False)
    else:
        out = _run(False)

    return out[:B] if B_p != B else out


def block_reference(x, w1, b1, w2, b2):
    h = jnp.tanh(x @ w1 + b1)
    return jnp.tanh(h @ w2 + b2) + x


if __name__ == "__main__":
    # Small shapes with lane-dense (128-multiple) feature dims.
    B, in_N, width, out_N = 256, 128, 256, 128

    key = jax.random.PRNGKey(0)
    kx, k1, k2, k3, k4 = jax.random.split(key, 5)

    x = jax.random.normal(kx, (B, in_N), dtype=jnp.float32)

    # PyTorch-Linear-style uniform init, stored pre-transposed.
    bound1 = 1.0 / jnp.sqrt(in_N)
    bound2 = 1.0 / jnp.sqrt(width)
    w1 = jax.random.uniform(k1, (in_N, width), jnp.float32, -bound1, bound1)
    b1 = jax.random.uniform(k2, (width,), jnp.float32, -bound1, bound1)
    w2 = jax.random.uniform(k3, (width, out_N), jnp.float32, -bound2, bound2)
    b2 = jax.random.uniform(k4, (out_N,), jnp.float32, -bound2, bound2)

    ref = block_reference(x, w1, b1, w2, b2)

    # 1) f32, auto tiling: tile_b=128 -> 2 batch steps (both v7x TCs busy),
    #    tile_w=width -> single-buffered resident weights.
    out = jax.block_until_ready(block_forward(x, w1, b1, w2, b2))
    assert out.shape == (B, out_N)
    assert jnp.allclose(out, ref, atol=1e-4, rtol=1e-4), "f32 mismatch vs reference"

    # 2) forced width(K) tiling: tile_w=128 -> grid=(2,2); exercises the f32
    #    accumulator init/finalize path.
    out_k = jax.block_until_ready(block_forward(x, w1, b1, w2, b2, tile_w=128))
    assert jnp.allclose(out_k, ref, atol=1e-4, rtol=1e-4), "K-tiled mismatch"

    # 3) ragged batch: B=200 is padded to a tile multiple and sliced back.
    out_r = jax.block_until_ready(block_forward(x[:200], w1, b1, w2, b2))
    assert out_r.shape == (200, out_N)
    assert jnp.allclose(out_r, ref[:200], atol=1e-4, rtol=1e-4), "ragged-B mismatch"

    # 4) native bf16 operands (f32 accumulate + f32 epilogue inside the kernel).
    xb = x.astype(jnp.bfloat16)
    w1b, b1b = w1.astype(jnp.bfloat16), b1.astype(jnp.bfloat16)
    w2b, b2b = w2.astype(jnp.bfloat16), b2.astype(jnp.bfloat16)
    out_b = jax.block_until_ready(block_forward(xb, w1b, b1b, w2b, b2b))
    assert out_b.shape == (B, out_N)
    assert bool(jnp.all(jnp.isfinite(out_b.astype(jnp.float32))))
    assert jnp.allclose(out_b.astype(jnp.float32), ref, atol=1e-1, rtol=1e-1), \
        "bf16 mismatch vs f32 reference"

    # 5) f32 inputs with bf16 MXU compute (compute_dtype option).
    out_c = jax.block_until_ready(
        block_forward(x, w1, b1, w2, b2, compute_dtype=jnp.bfloat16))
    assert jnp.allclose(out_c, ref, atol=1e-1, rtol=1e-1), "bf16-compute mismatch"

    print("KERNEL_OK")
</pallas_src>

<mosaic_0001>
module attributes {stable_mosaic.version = 11 : i64} {
  func.func @block_kernel(%arg0: i32, %arg1: i32, %arg2: memref<128x128xf32, #tpu.memory_space<vmem>>, %arg3: memref<128x256xf32, #tpu.memory_space<vmem>>, %arg4: memref<1x256xf32, #tpu.memory_space<vmem>>, %arg5: memref<256x128xf32, #tpu.memory_space<vmem>>, %arg6: memref<1x128xf32, #tpu.memory_space<vmem>>, %arg7: memref<128x128xf32, #tpu.memory_space<vmem>>, %arg8: memref<128x128xf32, #tpu.memory_space<vmem>>) attributes {dimension_semantics = [#tpu.dimension_semantics<parallel>, #tpu.dimension_semantics<arbitrary>], iteration_bounds = array<i64: 2, 1>, scalar_prefetch = 0 : i64, scratch_operands = 1 : i64, tpu.core_type = #tpu.core_type<tc>, window_params = [{transform_indices = @transform_0, window_bounds = array<i64: 128, 128>}, {pipeline_mode = #tpu.pipeline_mode<synchronous>, transform_indices = @transform_1, window_bounds = array<i64: 128, 256>}, {pipeline_mode = #tpu.pipeline_mode<synchronous>, transform_indices = @transform_2, window_bounds = array<i64: 1, 256>}, {pipeline_mode = #tpu.pipeline_mode<synchronous>, transform_indices = @transform_3, window_bounds = array<i64: 256, 128>}, {pipeline_mode = #tpu.pipeline_mode<synchronous>, transform_indices = @transform_4, window_bounds = array<i64: 1, 128>}, {transform_indices = @transform_5, window_bounds = array<i64: 128, 128>}]} {
    %c0_i32 = arith.constant 0 : i32
    %0 = arith.cmpi eq, %arg1, %c0_i32 : i32
    %1 = arith.extui %0 : i1 to i32
    %c0_i32_0 = arith.constant 0 : i32
    %2 = arith.cmpi ne, %1, %c0_i32_0 : i32
    scf.if %2 {
      %cst_15 = arith.constant 0.000000e+00 : f32
      %18 = vector.broadcast %cst_15 : f32 to vector<128x128xf32>
      %c0_16 = arith.constant 0 : index
      %c0_17 = arith.constant 0 : index
      %19 = vector.load %arg8[%c0_16, %c0_17] : memref<128x128xf32, #tpu.memory_space<vmem>>, vector<128x128xf32>
      tpu.vector_store %arg8[%c0_16, %c0_17], %18 {strides = array<i32>} : memref<128x128xf32, #tpu.memory_space<vmem>>, vector<128x128xf32>,
    } else {
    }
    %c0 = arith.constant 0 : index
    %c0_1 = arith.constant 0 : index
    %3 = vector.load %arg2[%c0, %c0_1] : memref<128x128xf32, #tpu.memory_space<vmem>>, vector<128x128xf32>
    %c0_2 = arith.constant 0 : index
    %c0_3 = arith.constant 0 : index
    %4 = vector.load %arg3[%c0_2, %c0_3] : memref<128x256xf32, #tpu.memory_space<vmem>>, vector<128x256xf32>
    %cst = arith.constant dense<0.000000e+00> : vector<128x256xf32>
    %5 = tpu.matmul %3, %4, %cst {dimension_numbers = #tpu.dot_dimension_numbers<[1], [0], [0], [1], [0, 0, 1, 1], [], []>} : vector<128x128xf32>, vector<128x256xf32>, vector<128x256xf32> -> vector<128x256xf32>
    %c0_4 = arith.constant 0 : index
    %c0_5 = arith.constant 0 : index
    %6 = vector.load %arg4[%c0_4, %c0_5] : memref<1x256xf32, #tpu.memory_space<vmem>>, vector<1x256xf32>
    %7 = vector.broadcast %6 : vector<1x256xf32> to vector<128x256xf32>
    %8 = arith.addf %5, %7 : vector<128x256xf32>
    %9 = math.tanh %8 : vector<128x256xf32>
    %c0_6 = arith.constant 0 : index
    %c0_7 = arith.constant 0 : index
    %10 = vector.load %arg5[%c0_6, %c0_7] : memref<256x128xf32, #tpu.memory_space<vmem>>, vector<256x128xf32>
    %c0_8 = arith.constant 0 : index
    %c0_9 = arith.constant 0 : index
    %11 = vector.load %arg8[%c0_8, %c0_9] : memref<128x128xf32, #tpu.memory_space<vmem>>, vector<128x128xf32>
    %cst_10 = arith.constant dense<0.000000e+00> : vector<128x128xf32>
    %12 = tpu.matmul %9, %10, %cst_10 {dimension_numbers = #tpu.dot_dimension_numbers<[1], [0], [0], [1], [0, 0, 1, 1], [], []>} : vector<128x256xf32>, vector<256x128xf32>, vector<128x128xf32> -> vector<128x128xf32>
    %13 = arith.addf %11, %12 : vector<128x128xf32>
    %c0_11 = arith.constant 0 : index
    %c0_12 = arith.constant 0 : index
    %14 = vector.load %arg8[%c0_11, %c0_12] : memref<128x128xf32, #tpu.memory_space<vmem>>, vector<128x128xf32>
    tpu.vector_store %arg8[%c0_11, %c0_12], %13 {strides = array<i32>} : memref<128x128xf32, #tpu.memory_space<vmem>>, vector<128x128xf32>,
    %c0_i32_13 = arith.constant 0 : i32
    %15 = arith.cmpi eq, %arg1, %c0_i32_13 : i32
    %16 = arith.extui %15 : i1 to i32
    %c0_i32_14 = arith.constant 0 : i32
    %17 = arith.cmpi ne, %16, %c0_i32_14 : i32
    scf.if %17 {
      %c0_15 = arith.constant 0 : index
      %c0_16 = arith.constant 0 : index
      %18 = vector.load %arg8[%c0_15, %c0_16] : memref<128x128xf32, #tpu.memory_space<vmem>>, vector<128x128xf32>
      %c0_17 = arith.constant 0 : index
      %c0_18 = arith.constant 0 : index
      %19 = vector.load %arg6[%c0_17, %c0_18] : memref<1x128xf32, #tpu.memory_space<vmem>>, vector<1x128xf32>
      %20 = vector.broadcast %19 : vector<1x128xf32> to vector<128x128xf32>
      %21 = arith.addf %18, %20 : vector<128x128xf32>
      %22 = math.tanh %21 : vector<128x128xf32>
      %23 = arith.addf %22, %3 : vector<128x128xf32>
      %c0_19 = arith.constant 0 : index
      %c0_20 = arith.constant 0 : index
      %24 = vector.load %arg7[%c0_19, %c0_20] : memref<128x128xf32, #tpu.memory_space<vmem>>, vector<128x128xf32>
      tpu.vector_store %arg7[%c0_19, %c0_20], %23 {strides = array<i32>} : memref<128x128xf32, #tpu.memory_space<vmem>>, vector<128x128xf32>,
    } else {
    }
    return
  }
  func.func @transform_0(%arg0: i32, %arg1: i32) -> (i32, i32) {
    %c0_i32 = arith.constant 0 : i32
    %c0_i32_0 = arith.constant 0 : i32
    return %arg0, %c0_i32 : i32, i32
  }
  func.func @transform_1(%arg0: i32, %arg1: i32) -> (i32, i32) {
    %c0_i32 = arith.constant 0 : i32
    %c0_i32_0 = arith.constant 0 : i32
    return %c0_i32, %arg1 : i32, i32
  }
  func.func @transform_2(%arg0: i32, %arg1: i32) -> (i32, i32) {
    %c0_i32 = arith.constant 0 : i32
    %c0_i32_0 = arith.constant 0 : i32
    return %c0_i32, %arg1 : i32, i32
  }
  func.func @transform_3(%arg0: i32, %arg1: i32) -> (i32, i32) {
    %c0_i32 = arith.constant 0 : i32
    %c0_i32_0 = arith.constant 0 : i32
    return %arg1, %c0_i32 : i32, i32
  }
  func.func @transform_4(%arg0: i32, %arg1: i32) -> (i32, i32) {
    %c0_i32 = arith.constant 0 : i32
    %c0_i32_0 = arith.constant 0 : i32
    %c0_i32_1 = arith.constant 0 : i32
    return %c0_i32, %c0_i32_0 : i32, i32
  }
  func.func @transform_5(%arg0: i32, %arg1: i32) -> (i32, i32) {
    %c0_i32 = arith.constant 0 : i32
    %c0_i32_0 = arith.constant 0 : i32
    return %arg0, %c0_i32 : i32, i32
  }
}

module attributes {stable_mosaic.version = 11 : i64} {
  func.func @block_kernel(%arg0: i32, %arg1: i32, %arg2: memref<128x128xf32, #tpu.memory_space<vmem>>, %arg3: memref<128x256xf32, #tpu.memory_space<vmem>>, %arg4: memref<1x256xf32, #tpu.memory_space<vmem>>, %arg5: memref<256x128xf32, #tpu.memory_space<vmem>>, %arg6: memref<1x128xf32, #tpu.memory_space<vmem>>, %arg7: memref<128x128xf32, #tpu.memory_space<vmem>>, %arg8: memref<128x128xf32, #tpu.memory_space<vmem>>) attributes {dimension_semantics = [#tpu.dimension_semantics<parallel>, #tpu.dimension_semantics<arbitrary>], iteration_bounds = array<i64: 2, 1>, scalar_prefetch = 0 : i64, scratch_operands = 1 : i64, tpu.core_type = #tpu.core_type<tc>, window_params = [{transform_indices = @transform_0, window_bounds = array<i64: 128, 128>}, {transform_indices = @transform_1, window_bounds = array<i64: 128, 256>}, {transform_indices = @transform_2, window_bounds = array<i64: 1, 256>}, {transform_indices = @transform_3, window_bounds = array<i64: 256, 128>}, {pipeline_mode = #tpu.pipeline_mode<synchronous>, transform_indices = @transform_4, window_bounds = array<i64: 1, 128>}, {transform_indices = @transform_5, window_bounds = array<i64: 128, 128>}]} {
    %c0_i32 = arith.constant 0 : i32
    %0 = arith.cmpi eq, %arg1, %c0_i32 : i32
    %1 = arith.extui %0 : i1 to i32
    %c0_i32_0 = arith.constant 0 : i32
    %2 = arith.cmpi ne, %1, %c0_i32_0 : i32
    scf.if %2 {
      %cst_15 = arith.constant 0.000000e+00 : f32
      %18 = vector.broadcast %cst_15 : f32 to vector<128x128xf32>
      %c0_16 = arith.constant 0 : index
      %c0_17 = arith.constant 0 : index
      %19 = vector.load %arg8[%c0_16, %c0_17] : memref<128x128xf32, #tpu.memory_space<vmem>>, vector<128x128xf32>
      tpu.vector_store %arg8[%c0_16, %c0_17], %18 {strides = array<i32>} : memref<128x128xf32, #tpu.memory_space<vmem>>, vector<128x128xf32>,
    } else {
    }
    %c0 = arith.constant 0 : index
    %c0_1 = arith.constant 0 : index
    %3 = vector.load %arg2[%c0, %c0_1] : memref<128x128xf32, #tpu.memory_space<vmem>>, vector<128x128xf32>
    %c0_2 = arith.constant 0 : index
    %c0_3 = arith.constant 0 : index
    %4 = vector.load %arg3[%c0_2, %c0_3] : memref<128x256xf32, #tpu.memory_space<vmem>>, vector<128x256xf32>
    %cst = arith.constant dense<0.000000e+00> : vector<128x256xf32>
    %5 = tpu.matmul %3, %4, %cst {dimension_numbers = #tpu.dot_dimension_numbers<[1], [0], [0], [1], [0, 0, 1, 1], [], []>} : vector<128x128xf32>, vector<128x256xf32>, vector<128x256xf32> -> vector<128x256xf32>
    %c0_4 = arith.constant 0 : index
    %c0_5 = arith.constant 0 : index
    %6 = vector.load %arg4[%c0_4, %c0_5] : memref<1x256xf32, #tpu.memory_space<vmem>>, vector<1x256xf32>
    %7 = vector.broadcast %6 : vector<1x256xf32> to vector<128x256xf32>
    %8 = arith.addf %5, %7 : vector<128x256xf32>
    %9 = math.tanh %8 : vector<128x256xf32>
    %c0_6 = arith.constant 0 : index
    %c0_7 = arith.constant 0 : index
    %10 = vector.load %arg5[%c0_6, %c0_7] : memref<256x128xf32, #tpu.memory_space<vmem>>, vector<256x128xf32>
    %c0_8 = arith.constant 0 : index
    %c0_9 = arith.constant 0 : index
    %11 = vector.load %arg8[%c0_8, %c0_9] : memref<128x128xf32, #tpu.memory_space<vmem>>, vector<128x128xf32>
    %cst_10 = arith.constant dense<0.000000e+00> : vector<128x128xf32>
    %12 = tpu.matmul %9, %10, %cst_10 {dimension_numbers = #tpu.dot_dimension_numbers<[1], [0], [0], [1], [0, 0, 1, 1], [], []>} : vector<128x256xf32>, vector<256x128xf32>, vector<128x128xf32> -> vector<128x128xf32>
    %13 = arith.addf %11, %12 : vector<128x128xf32>
    %c0_11 = arith.constant 0 : index
    %c0_12 = arith.constant 0 : index
    %14 = vector.load %arg8[%c0_11, %c0_12] : memref<128x128xf32, #tpu.memory_space<vmem>>, vector<128x128xf32>
    tpu.vector_store %arg8[%c0_11, %c0_12], %13 {strides = array<i32>} : memref<128x128xf32, #tpu.memory_space<vmem>>, vector<128x128xf32>,
    %c0_i32_13 = arith.constant 0 : i32
    %15 = arith.cmpi eq, %arg1, %c0_i32_13 : i32
    %16 = arith.extui %15 : i1 to i32
    %c0_i32_14 = arith.constant 0 : i32
    %17 = arith.cmpi ne, %16, %c0_i32_14 : i32
    scf.if %17 {
      %c0_15 = arith.constant 0 : index
      %c0_16 = arith.constant 0 : index
      %18 = vector.load %arg8[%c0_15, %c0_16] : memref<128x128xf32, #tpu.memory_space<vmem>>, vector<128x128xf32>
      %c0_17 = arith.constant 0 : index
      %c0_18 = arith.constant 0 : index
      %19 = vector.load %arg6[%c0_17, %c0_18] : memref<1x128xf32, #tpu.memory_space<vmem>>, vector<1x128xf32>
      %20 = vector.broadcast %19 : vector<1x128xf32> to vector<128x128xf32>
      %21 = arith.addf %18, %20 : vector<128x128xf32>
      %22 = math.tanh %21 : vector<128x128xf32>
      %23 = arith.addf %22, %3 : vector<128x128xf32>
      %c0_19 = arith.constant 0 : index
      %c0_20 = arith.constant 0 : index
      %24 = vector.load %arg7[%c0_19, %c0_20] : memref<128x128xf32, #tpu.memory_space<vmem>>, vector<128x128xf32>
      tpu.vector_store %arg7[%c0_19, %c0_20], %23 {strides = array<i32>} : memref<128x128xf32, #tpu.memory_space<vmem>>, vector<128x128xf32>,
    } else {
    }
    return
  }
  func.func @transform_0(%arg0: i32, %arg1: i32) -> (i32, i32) {
    %c0_i32 = arith.constant 0 : i32
    %c0_i32_0 = arith.constant 0 : i32
    return %arg0, %c0_i32 : i32, i32
  }
  func.func @transform_1(%arg0: i32, %arg1: i32) -> (i32, i32) {
    %c0_i32 = arith.constant 0 : i32
    %c0_i32_0 = arith.constant 0 : i32
    return %c0_i32, %arg1 : i32, i32
  }
  func.func @transform_2(%arg0: i32, %arg1: i32) -> (i32, i32) {
    %c0_i32 = arith.constant 0 : i32
    %c0_i32_0 = arith.constant 0 : i32
    return %c0_i32, %arg1 : i32, i32
  }
  func.func @transform_3(%arg0: i32, %arg1: i32) -> (i32, i32) {
    %c0_i32 = arith.constant 0 : i32
    %c0_i32_0 = arith.constant 0 : i32
    return %arg1, %c0_i32 : i32, i32
  }
  func.func @transform_4(%arg0: i32, %arg1: i32) -> (i32, i32) {
    %c0_i32 = arith.constant 0 : i32
    %c0_i32_0 = arith.constant 0 : i32
    %c0_i32_1 = arith.constant 0 : i32
    return %c0_i32, %c0_i32_0 : i32, i32
  }
  func.func @transform_5(%arg0: i32, %arg1: i32) -> (i32, i32) {
    %c0_i32 = arith.constant 0 : i32
    %c0_i32_0 = arith.constant 0 : i32
    return %arg0, %c0_i32 : i32, i32
  }
}

</mosaic_0001>

<bundles_post_ra>
// kernel: tpu_custom_call.1
= control target key start
LH: loop header
LB: loop body
LE: loop exit
PB: predicated region body
PF: predicated region fallthrough
CT: control target
= control target key end

     0   :  { %s1823_s0 = inlined_call_operand.hbm [shape: f32[256,128], index: 0, kind: input, shape index: {}]   ;;  %s1824_s1 = inlined_call_operand.hbm [shape: f32[128,256], index: 1, kind: input, shape index: {}]   ;;  %s1825_s2 = inlined_call_operand.hbm [shape: f32[1,256], index: 2, kind: input, shape index: {}]   ;;  %s1826_s3 = inlined_call_operand.hbm [shape: f32[256,128], index: 3, kind: input, shape index: {}]   ;;  %s1827_s4 = inlined_call_operand.vmem [shape: f32[1,128], index: 4, kind: input, shape index: {}]   ;;  %s1828_s5 = inlined_call_operand.hbm [shape: f32[256,128], index: 5, kind: output, shape index: {}]  }
   0x1   :  { %1831 = sst [smem:[#allocation16_spill]] %s1824_s1 }
   0x2   :  { %1832 = sst [smem:[#allocation17_spill]] %s1825_s2 }
   0x3   :  { %1833 = sst [smem:[#allocation18_spill]] %s1826_s3 }
   0x4   :  { %10 = vsyncpa [#allocation4], 0 }
   0x5   :  { %12 = vsyncpa [#allocation4 + $0x1], 0 }
   0x6   :  { %13 = vsyncpa [#allocation7], 0 }
   0x7   :  { %14 = vsyncpa [#allocation10], 0 }
   0x8   :  { %15 = vsyncpa [#allocation5], 0 }
   0x9   :  { %17 = vsyncpa [#allocation5 + $0x1], 0  ;;  %s1468_s18 = smov 0   ;;  %s1470_s19 = smov 0  }
   0xa   :  { %s1472_s20 = smov 0   ;;  %s1474_s21 = smov 0  }
   0xb   :  { %s1476_s22 = smov 0   ;;  %s1478_s23 = smov 0  }
   0xc LB: > { %s998_s24 = sadd.s32 4294967295, %s1427_s23   ;;  %s999_s25 = sadd.s32 4294967294, %s1427_s23   ;;  %s1427_s23 = sphi %s1478_s23, %s23_s23   ;;  %s1423_s22 = sphi %s1476_s22, %s1851_s22   ;;  %s1419_s21 = sphi %s1474_s21, %s1850_s21   ;;  %s1415_s20 = sphi %s1472_s20, %s1849_s20   ;;  %s1411_s19 = sphi %s1470_s19, %s1848_s19   ;;  %s1407_s18 = sphi %s1468_s18, %s1847_s18  }
   0xd   : > { %p55_p0 = scmp.ne.s32.totalorder %s1411_s19, %s1407_s18  ;;  %p1502_p1 = scmp.eq.s32.totalorder %s998_s24, 0 }
   0xe   : > { %p1506_p2 = scmp.eq.s32.totalorder %s998_s24, 1  ;;  %p184_p3 = scmp.eq.s32.totalorder %s999_s25, 1 }
   0xf   : > { %p1512_p4 = por %p1502_p1, %p55_p0  ;;  %p1000_p5 = scmp.ge.s32.totalorder %s1427_s23, 1 }
  0x10   : > { %p1517_p6 = por %p184_p3, %p55_p0  ;;  %p191_p7 = scmp.lt.s32.totalorder %s1427_s23, 3 }
  0x11   : > { %s1838_s1 = sld [smem:[#allocation16_spill]]  ;;  %s1429_s9 = smov [#allocation6]  }
  0x12   : > { %p1525_p8 = pnand %p1000_p5, %p191_p7  ;;  %s207_s10 = sshll.u32 %s1429_s9, 4  ;;  %s208_s10 = int_to_ptr.vmem [resolvable:$true] %s207_s10 }
  0x13   : > { %p1004_p11 = scmp.ge.s32.totalorder %s1427_s23, 2  ;;  %s1841_s2 = sld [smem:[#allocation17_spill]] }
  0x14   : > { %p1037_p9 = pneg %p1525_p8  ;;  %s1430_s15 = smov 256  }
  0x15   : > { %s1431_s16 = smov 16   ;;  %s1432_s17 = smov [#allocation8]  }
  0x16   : > { %p1533_p10 = pnand %p1037_p9, %p1502_p1  ;;  %s224_s24 = sshll.u32 %s1432_s17, 4  ;;  %s225_s24 = int_to_ptr.vmem [resolvable:$true] %s224_s24 }
  0x17   : > { %s205_s7 = sshll.u32 %s1838_s1, 4  ;;  %s1842_s3 = sld [smem:[#allocation18_spill]]  ;;  %s206_s7 = int_to_ptr.hbm [resolvable:$true] %s205_s7 }
  0x18   : > { %1040 = dma.hbm_to_vmem [thread:$0]  (!%p1533_p10), %s206_s7, 4096, %s208_s10, [#allocation7], %s1430_s15, %s1430_s15, %s1431_s16  }
  0x19   : > { %s222_s14 = sshll.u32 %s1841_s2, 4  ;;  %s1433_s9 = smov [#allocation9]   ;;  %s223_s14 = int_to_ptr.hbm [resolvable:$true] %s222_s14 }
  0x1a   : > { %1043 = dma.hbm_to_vmem [thread:$0]  (!%p1533_p10), %s223_s14, 32, %s225_s24, [#allocation7]  }
  0x1b   : > { %s238_s12 = sshll.u32 %s1433_s9, 4  ;;  %s1829_s13 = smov 128   ;;  %s239_s12 = int_to_ptr.vmem [resolvable:$true] %s238_s12 }
  0x1c   : > { %s1830_s7 = smov 8   ;;  %s42_s10 = sadd.s32 1, %s1415_s20 }
  0x1d   : > { %s236_s6 = sshll.u32 %s1842_s3, 4  ;;  %s35_s15 = sadd.s32 1, %s1423_s22  ;;  %s237_s6 = int_to_ptr.hbm [resolvable:$true] %s236_s6 }
  0x1e   : > { %1046 = dma.hbm_to_vmem [thread:$0]  (!%p1533_p10), %s237_s6, 4096, %s239_s12, [#allocation10], %s1829_s13, %s1829_s13, %s1830_s7  }
  0x1f   : > { %p49_p12 = scmp.ne.s32.totalorder %s1415_s20, %s1411_s19  ;;  %p37_p13 = scmp.ge.s32.totalorder %s35_s15, 2 }
  0x20   : > { %p50_p0 = scmp.eq.s32.totalorder %s1427_s23, 0  ;;  %p1058_p5 = scmp.lt.s32.totalorder %s1427_s23, 2 }
  0x21   : > { %p1560_p3 = por %p1506_p2, %p49_p12  ;;  %s1853_s15 = smov (%p37_p13, %s35_s15), 0 }
  0x22   : > { %p1567_p7 = por %p50_p0, %p49_p12  ;;  %s255_s16 = sand.u32 1, %s1415_s20  }
  0x23   : > { %s39_s17 = ssub.s32 %s1423_s22, %s1853_s15  ;;  %s1005_s24 = sshll.u32 %s255_s16, 7 }
  0x24   : > { %p40_p9 = scmp.eq.s32.totalorder %s39_s17, 0  ;;  %s1019_s25 = sshll.u32 %s1423_s22, 7 }
  0x25   : > { %s264_s9 = scalar_lea.hbm %s1823_s0, %s1019_s25  ;;  %s259_s12 = scalar_lea.vmem [#allocation3], %s1005_s24 }
  0x26   : > { %s1576_s27 = scalar_select %p40_p9, %s1415_s20, %s42_s10  }
  0x27   : > { %s267_s13 = sshll.u32 %s259_s12, 4  ;;  %s265_s7 = sshll.u32 %s264_s9, 4  ;;  %s268_s13 = int_to_ptr.vmem [resolvable:$true] %s267_s13  ;;  %s266_s7 = int_to_ptr.hbm [resolvable:$true] %s265_s7 }
  0x28   : > { %p1048_p2 = pnand %p1058_p5, %p1567_p7  ;;  %s256_s1 = scalar_lea.sflag [#allocation4], %s255_s16 }
  0x29   : > { %s1845_s2 = smov 8   ;;  %s1846_s3 = smov 128  }
  0x2a   : > { %1050 = dma.hbm_to_vmem [thread:$0]  (!%p1048_p2), %s266_s7, 2048, %s268_s13, %s256_s1, %s1846_s3, %s1846_s3, %s1845_s2  }
  0x2b   : > { %279 = sbr.rel (%p1525_p8) target bundleno = 490 (0x1ea), region = 40  ;;  %s1591_s10 = sand.u32 (!%p1525_p8), 1, %s1411_s19  }
  0x2c   : > { %s1009_s17 = sshll.u32 (!%p1525_p8), %s1591_s10, 7  ;;  %s282_s24 = scalar_lea.sflag (!%p1525_p8), [#allocation4], %s1591_s10 }
  0x2d   : > { %s1597_s11 = scalar_lea.vmem (!%p1525_p8), [#allocation3], %s1009_s17 }
  0x30   : > { %1390 = dma.done.wait (%p1512_p4), %s282_s24, 2048  }
  0x31   : > { %1392 = vsyncadd (%p1512_p4), %s282_s24, 4294965248 }
  0x32   : > { %1394 = dma.done.wait (%p1502_p1), [#allocation7], 4128  }
  0x33   : > { %1396 = vsyncadd (%p1502_p1), [#allocation7], 4294963168 }
  0x34   : > { %1398 = dma.done.wait (%p1502_p1), [#allocation10], 4096  }
  0x35   : > { %1400 = vsyncadd (%p1502_p1), [#allocation10], 4294963200  ;;  %v399_v0 = vld [vmem:[#allocation6 + $0xf0] sm:$0xff]  ;;  %v400_v1 = vld [vmem:[#allocation6 + $0xf8] sm:$0xff]  ;;  %s1737_s3 = scalar_lea.vmem [#allocation11], %s1009_s17  ;;  %s1020_s26 = sshll.u32 %s1419_s21, 7 }
  0x36   : > { %v397_v2 = vld [vmem:[#allocation6 + $0xe0] sm:$0xff]  ;;  %407 = vmatpush.msra.mxu0 %v399_v0  ;;  %472 = vmatpush.msra.mxu1 %v400_v1  ;;  %v398_v3 = vld [vmem:[#allocation6 + $0xe8] sm:$0xff]  ;;  %v395_v4 = vld [vmem:[#allocation6 + $0xd0] sm:$0xff]  ;;  %s878_s13 = scalar_lea.hbm %s1828_s5, %s1020_s26  ;;  %s879_s7 = sshll.u32 %s1737_s3, 4  ;;  %s880_s7 = int_to_ptr.vmem [resolvable:$true] %s879_s7 }
  0x37   : > { %v396_v5 = vld [vmem:[#allocation6 + $0xd8] sm:$0xff]  ;;  %v393_v6 = vld [vmem:[#allocation6 + $0xc0] sm:$0xff]  ;;  %v394_v7 = vld [vmem:[#allocation6 + $0xc8] sm:$0xff]  ;;  %s881_s16 = sshll.u32 %s878_s13, 4  ;;  %s867_s21 = scalar_lea.sflag [#allocation5], %s1591_s10  ;;  %s882_s16 = int_to_ptr.hbm [resolvable:$true] %s881_s16 }
  0x38   : > { %408 = vmatpush.msra.mxu0 %v397_v2  ;;  %473 = vmatpush.msra.mxu1 %v398_v3  ;;  %v391_v8 = vld [vmem:[#allocation6 + $0xb0] sm:$0xff]  ;;  %v392_v9 = vld [vmem:[#allocation6 + $0xb8] sm:$0xff]  ;;  %v389_v10 = vld [vmem:[#allocation6 + $0xa0] sm:$0xff]  ;;  %s1351_s25 = sshra.s32 %s882_s16, 4  ;;  %s1357_s12 = scalar_lea.hbm %s1828_s5, 256  ;;  %s1352_s25 = int_to_ptr.hbm [resolvable:$true] %s1351_s25 }
  0x39   : > { %v390_v11 = vld [vmem:[#allocation6 + $0xa8] sm:$0xff]  ;;  %v387_v12 = vld [vmem:[#allocation6 + $0x90] sm:$0xff]  ;;  %v388_v13 = vld [vmem:[#allocation6 + $0x98] sm:$0xff]  ;;  %s1353_s30 = scalar_lea.hbm %s1352_s25, 128  ;;  %p1358_p10 = scmp.lt.s32.totalorder %s1352_s25, %s1828_s5 }
  0x3a   : > { %409 = vmatpush.msra.mxu0 %v395_v4  ;;  %474 = vmatpush.msra.mxu1 %v396_v5  ;;  %v385_v14 = vld [vmem:[#allocation6 + $0x80] sm:$0xff]  ;;  %v386_v15 = vld [vmem:[#allocation6 + $0x88] sm:$0xff]  ;;  %v383_v16 = vld [vmem:[#allocation6 + $0x70] sm:$0xff]  ;;  %p1354_p1 = scmp.ne.s32.totalorder %s1352_s25, %s1353_s30  ;;  %p1359_p12 = scmp.lt.s32.totalorder %s1357_s12, %s1353_s30 }
  0x3b   : > { %v384_v17 = vld [vmem:[#allocation6 + $0x78] sm:$0xff]  ;;  %v381_v18 = vld [vmem:[#allocation6 + $0x60] sm:$0xff]  ;;  %v382_v19 = vld [vmem:[#allocation6 + $0x68] sm:$0xff] }
  0x3c   : > { %410 = vmatpush.msra.mxu0 %v393_v6  ;;  %475 = vmatpush.msra.mxu1 %v394_v7  ;;  %v379_v20 = vld [vmem:[#allocation6 + $0x50] sm:$0xff]  ;;  %v380_v21 = vld [vmem:[#allocation6 + $0x58] sm:$0xff]  ;;  %v377_v22 = vld [vmem:[#allocation6 + $0x40] sm:$0xff]  ;;  %p1355_p4 = pnand %p1354_p1, %p1560_p3  ;;  %p1360_p13 = por %p1359_p12, %p1358_p10 }
  0x3d   : > { %v378_v23 = vld [vmem:[#allocation6 + $0x48] sm:$0xff]  ;;  %v375_v24 = vld [vmem:[#allocation6 + $0x30] sm:$0xff]  ;;  %v376_v25 = vld [vmem:[#allocation6 + $0x38] sm:$0xff] }
  0x3e   : > { %411 = vmatpush.msra.mxu0 %v391_v8  ;;  %476 = vmatpush.msra.mxu1 %v392_v9  ;;  %v373_v26 = vld [vmem:[#allocation6 + $0x20] sm:$0xff]  ;;  %v374_v27 = vld [vmem:[#allocation6 + $0x28] sm:$0xff]  ;;  %v371_v28 = vld [vmem:[#allocation6 + $0x10] sm:$0xff]  ;;  %p1356_p8 = pneg %p1355_p4 }
  0x3f   : > { %v372_v29 = vld [vmem:[#allocation6 + $0x18] sm:$0xff]  ;;  %v369_v30 = vld [vmem:[#allocation6] sm:$0xff]  ;;  %v370_v31 = vld [vmem:[#allocation6 + $0x8] sm:$0xff] }
  0x40   : > { %412 = vmatpush.msra.mxu0 %v389_v10  ;;  %477 = vmatpush.msra.mxu1 %v390_v11  ;;  %v1612_v32 = vld [vmem:[%s1597_s11] sm:$0xff]  ;;  %v1617_v33 = vld [vmem:[%s1597_s11 + $0x8] sm:$0xff]  ;;  %v1622_v34 = vld [vmem:[%s1597_s11 + $0x10] sm:$0xff]  ;;  %p1361_p0 = pnand %p1360_p13, %p1356_p8 }
  0x41   : > { %v1627_v35 = vld [vmem:[%s1597_s11 + $0x18] sm:$0xff]  ;;  %v1632_v36 = vld [vmem:[%s1597_s11 + $0x20] sm:$0xff]  ;;  %v1637_v37 = vld [vmem:[%s1597_s11 + $0x28] sm:$0xff] }
  0x42   : > { %413 = vmatpush.msra.mxu0 %v387_v12  ;;  %478 = vmatpush.msra.mxu1 %v388_v13  ;;  %v1642_v38 = vld [vmem:[%s1597_s11 + $0x30] sm:$0xff]  ;;  %v1647_v39 = vld [vmem:[%s1597_s11 + $0x38] sm:$0xff]  ;;  %v1652_v40 = vld [vmem:[%s1597_s11 + $0x40] sm:$0xff] }
  0x43   : > { %v1657_v41 = vld [vmem:[%s1597_s11 + $0x48] sm:$0xff]  ;;  %v584_v42 = vld [vmem:[#allocation9 + $0x78] sm:$0xff]  ;;  %v583_v44 = vld [vmem:[#allocation9 + $0x70] sm:$0xff] }
  0x44   : > { %414 = vmatpush.msra.mxu0 %v385_v14  ;;  %479 = vmatpush.msra.mxu1 %v386_v15  ;;  %v600_v43 = vld [vmem:[#allocation9 + $0xf8] sm:$0xff]  ;;  %v599_v45 = vld [vmem:[#allocation9 + $0xf0] sm:$0xff]  ;;  %v582_v46 = vld [vmem:[#allocation9 + $0x68] sm:$0xff] }
  0x45   : > { %617 = vmatpush.msra.mxu2 %v584_v42  ;;  %682 = vmatpush.msra.mxu3 %v600_v43  ;;  %v598_v47 = vld [vmem:[#allocation9 + $0xe8] sm:$0xff]  ;;  %v581_v48 = vld [vmem:[#allocation9 + $0x60] sm:$0xff]  ;;  %v580_v51 = vld [vmem:[#allocation9 + $0x58] sm:$0xff] }
  0x46   : > { %415 = vmatpush.msra.mxu0 %v383_v16  ;;  %480 = vmatpush.msra.mxu1 %v384_v17  ;;  %v597_v49 = vld [vmem:[#allocation9 + $0xe0] sm:$0xff]  ;;  %v1662_v50 = vld [vmem:[%s1597_s11 + $0x50] sm:$0xff]  ;;  %v596_v52 = vld [vmem:[#allocation9 + $0xd8] sm:$0xff] }
  0x47   : > { %618 = vmatpush.msra.mxu2 %v583_v44  ;;  %683 = vmatpush.msra.mxu3 %v599_v45  ;;  %v579_v53 = vld [vmem:[#allocation9 + $0x50] sm:$0xff]  ;;  %v578_v55 = vld [vmem:[#allocation9 + $0x48] sm:$0xff]  ;;  %v577_v57 = vld [vmem:[#allocation9 + $0x40] sm:$0xff] }
  0x48   : > { %416 = vmatpush.msra.mxu0 %v381_v18  ;;  %481 = vmatpush.msra.mxu1 %v382_v19  ;;  %v595_v54 = vld [vmem:[#allocation9 + $0xd0] sm:$0xff]  ;;  %v594_v56 = vld [vmem:[#allocation9 + $0xc8] sm:$0xff]  ;;  %v593_v58 = vld [vmem:[#allocation9 + $0xc0] sm:$0xff] }
  0x49   : > { %619 = vmatpush.msra.mxu2 %v582_v46  ;;  %684 = vmatpush.msra.mxu3 %v598_v47  ;;  %v1667_v59 = vld [vmem:[%s1597_s11 + $0x58] sm:$0xff]  ;;  %v574_v0 = vld [vmem:[#allocation9 + $0x28] sm:$0xff]  ;;  %v1672_v2 = vld [vmem:[%s1597_s11 + $0x60] sm:$0xff] }
  0x4a   : > { %417 = vmatpush.msra.mxu0 %v379_v20  ;;  %482 = vmatpush.msra.mxu1 %v380_v21  ;;  %v576_v60 = vld [vmem:[#allocation9 + $0x38] sm:$0xff]  ;;  %v575_v62 = vld [vmem:[#allocation9 + $0x30] sm:$0xff]  ;;  %v590_v1 = vld [vmem:[#allocation9 + $0xa8] sm:$0xff] }
  0x4b   : > { %620 = vmatpush.msra.mxu2 %v581_v48  ;;  %685 = vmatpush.msra.mxu3 %v597_v49  ;;  %v592_v61 = vld [vmem:[#allocation9 + $0xb8] sm:$0xff]  ;;  %v591_v63 = vld [vmem:[#allocation9 + $0xb0] sm:$0xff]  ;;  %v573_v3 = vld [vmem:[#allocation9 + $0x20] sm:$0xff] }
  0x4c   : > { %418 = vmatpush.msra.mxu0 %v377_v22  ;;  %483 = vmatpush.msra.mxu1 %v378_v23  ;;  %v589_v4 = vld [vmem:[#allocation9 + $0xa0] sm:$0xff]  ;;  %v572_v5 = vld [vmem:[#allocation9 + $0x18] sm:$0xff]  ;;  %v571_v7 = vld [vmem:[#allocation9 + $0x10] sm:$0xff] }
  0x4d   : > { %621 = vmatpush.msra.mxu2 %v580_v51  ;;  %686 = vmatpush.msra.mxu3 %v596_v52  ;;  %v588_v6 = vld [vmem:[#allocation9 + $0x98] sm:$0xff]  ;;  %v587_v8 = vld [vmem:[#allocation9 + $0x90] sm:$0xff]  ;;  %v570_v9 = vld [vmem:[#allocation9 + $0x8] sm:$0xff] }
  0x4e   : > { %419 = vmatpush.msra.mxu0 %v375_v24  ;;  %484 = vmatpush.msra.mxu1 %v376_v25  ;;  %v586_v10 = vld [vmem:[#allocation9 + $0x88] sm:$0xff]  ;;  %v569_v12 = vld [vmem:[#allocation9] sm:$0xff]  ;;  %v1687_v15 = vld [vmem:[%s1597_s11 + $0x78] sm:$0xff] }
  0x4f   : > { %622 = vmatpush.msra.mxu2 %v579_v53  ;;  %687 = vmatpush.msra.mxu3 %v595_v54  ;;  %v1677_v11 = vld [vmem:[%s1597_s11 + $0x68] sm:$0xff]  ;;  %v1682_v14 = vld [vmem:[%s1597_s11 + $0x70] sm:$0xff]  ;;  %v401_v16 = vld [vmem:[#allocation8] sm:$0x3] }
  0x50   : > { %420 = vmatpush.msra.mxu0 %v373_v26  ;;  %485 = vmatpush.msra.mxu1 %v374_v27  ;;  %v585_v13 = vld [vmem:[#allocation9 + $0x80] sm:$0xff]  ;;  %v1691_v17 = vperm.slane %v401_v16, 0  ;;  %v1693_v18 = vperm.slane %v401_v16, 1 }
  0x51   : > { %623 = vmatpush.msra.mxu2 %v578_v55  ;;  %688 = vmatpush.msra.mxu3 %v594_v56 }
  0x52   : > { %421 = vmatpush.msra.mxu0 %v371_v28  ;;  %486 = vmatpush.msra.mxu1 %v372_v29 }
  0x53   : > { %624 = vmatpush.msra.mxu2 %v577_v57  ;;  %689 = vmatpush.msra.mxu3 %v593_v58 }
  0x54   : > { %422 = vmatpush.msra.mxu0 %v369_v30  ;;  %487 = vmatpush.msra.mxu1 %v370_v31 }
  0x55   : > { %423 = vmatmul.f32.vlgmr.msra.gmra.mxu0 %v1612_v32  ;;  %488 = vmatmul.f32.vlgmr.msra.gmra.mxu1 %v1612_v32 }
  0x56   : > { %625 = vmatpush.msra.mxu2 %v576_v60  ;;  %690 = vmatpush.msra.mxu3 %v592_v61 }
  0x58   : > { %626 = vmatpush.msra.mxu2 %v575_v62  ;;  %691 = vmatpush.msra.mxu3 %v591_v63 }
  0x5a   : > { %627 = vmatpush.msra.mxu2 %v574_v0  ;;  %692 = vmatpush.msra.mxu3 %v590_v1 }
  0x5c   : > { %628 = vmatpush.msra.mxu2 %v573_v3  ;;  %693 = vmatpush.msra.mxu3 %v589_v4 }
  0x5d   : > { %426 = vmatmul.f32.gmra.mxu0 %v1617_v33  ;;  %491 = vmatmul.f32.gmra.mxu1 %v1617_v33 }
  0x5e   : > { %629 = vmatpush.msra.mxu2 %v572_v5  ;;  %694 = vmatpush.msra.mxu3 %v588_v6 }
  0x60   : > { %630 = vmatpush.msra.mxu2 %v571_v7  ;;  %695 = vmatpush.msra.mxu3 %v587_v8 }
  0x62   : > { %631 = vmatpush.msra.mxu2 %v570_v9  ;;  %696 = vmatpush.msra.mxu3 %v586_v10 }
  0x64   : > { %632 = vmatpush.msra.mxu2 %v569_v12  ;;  %697 = vmatpush.msra.mxu3 %v585_v13 }
  0x65   : > { %429 = vmatmul.f32.gmra.mxu0 %v1622_v34  ;;  %494 = vmatmul.f32.gmra.mxu1 %v1622_v34 }
  0x6d   : > { %432 = vmatmul.f32.gmra.mxu0 %v1627_v35  ;;  %497 = vmatmul.f32.gmra.mxu1 %v1627_v35 }
  0x75   : > { %435 = vmatmul.f32.gmra.mxu0 %v1632_v36  ;;  %500 = vmatmul.f32.gmra.mxu1 %v1632_v36 }
  0x7d   : > { %438 = vmatmul.f32.gmra.mxu0 %v1637_v37  ;;  %503 = vmatmul.f32.gmra.mxu1 %v1637_v37 }
  0x85   : > { %441 = vmatmul.f32.gmra.mxu0 %v1642_v38  ;;  %506 = vmatmul.f32.gmra.mxu1 %v1642_v38 }
  0x8d   : > { %444 = vmatmul.f32.gmra.mxu0 %v1647_v39  ;;  %509 = vmatmul.f32.gmra.mxu1 %v1647_v39 }
  0x95   : > { %447 = vmatmul.f32.gmra.mxu0 %v1652_v40  ;;  %512 = vmatmul.f32.gmra.mxu1 %v1652_v40 }
  0x9d   : > { %450 = vmatmul.f32.gmra.mxu0 %v1657_v41  ;;  %515 = vmatmul.f32.gmra.mxu1 %v1657_v41 }
  0xa5   : > { %453 = vmatmul.f32.gmra.mxu0 %v1662_v50  ;;  %518 = vmatmul.f32.gmra.mxu1 %v1662_v50 }
  0xad   : > { %456 = vmatmul.f32.gmra.mxu0 %v1667_v59  ;;  %521 = vmatmul.f32.gmra.mxu1 %v1667_v59 }
  0xb5   : > { %459 = vmatmul.f32.gmra.mxu0 %v1672_v2  ;;  %524 = vmatmul.f32.gmra.mxu1 %v1672_v2 }
  0xbd   : > { %462 = vmatmul.f32.gmra.mxu0 %v1677_v11  ;;  %527 = vmatmul.f32.gmra.mxu1 %v1677_v11 }
  0xc5   : > { %465 = vmatmul.f32.gmra.mxu0 %v1682_v14  ;;  %530 = vmatmul.f32.gmra.mxu1 %v1682_v14 }
  0xcd   : > { %468 = vmatmul.f32.gmra.mxu0 %v1687_v15  ;;  %533 = vmatmul.f32.gmra.mxu1 %v1687_v15 }
  0xd2   : > { %v424_v19 = vpop.f32.mrf.mxu0  ;;  %v489_v20 = vpop.f32.mrf.mxu1 }
  0xd3   : > { %v425_v21 = vadd.f32 %v424_v19, %v1691_v17  ;;  %v490_v22 = vadd.f32 %v489_v20, %v1693_v18 }
  0xd5   : > { %1121 = vtanh.f32 %v425_v21 }
  0xd6   : > { %1123 = vtanh.f32 %v490_v22 }
  0xda   : > { %v427_v23 = vpop.f32.mrf.mxu0  ;;  %v492_v24 = vpop.f32.mrf.mxu1 }
  0xdb   : > { %v1122_v25 = vpop.eup %1121  ;;  %v428_v26 = vadd.f32 %v427_v23, %v1691_v17  ;;  %v493_v27 = vadd.f32 %v492_v24, %v1693_v18 }
  0xdc   : > { %v1124_v28 = vpop.eup %1123  ;;  %633 = vmatmul.f32.vlgmr.msra.gmra.mxu2 %v1122_v25 }
  0xdd   : > { %1125 = vtanh.f32 %v428_v26  ;;  %698 = vmatmul.f32.vlgmr.msra.gmra.mxu3 %v1124_v28 }
  0xde   : > { %1127 = vtanh.f32 %v493_v27 }
  0xe2   : > { %v430_v29 = vpop.f32.mrf.mxu0  ;;  %v495_v30 = vpop.f32.mrf.mxu1 }
  0xe3   : > { %v1126_v31 = vpop.eup %1125  ;;  %v431_v42 = vadd.f32 %v430_v29, %v1691_v17  ;;  %v496_v43 = vadd.f32 %v495_v30, %v1693_v18 }
  0xe4   : > { %v1128_v44 = vpop.eup %1127  ;;  %636 = vmatmul.f32.gmra.mxu2 %v1126_v31 }
  0xe5   : > { %1129 = vtanh.f32 %v431_v42  ;;  %701 = vmatmul.f32.gmra.mxu3 %v1128_v44 }
  0xe6   : > { %1131 = vtanh.f32 %v496_v43 }
  0xea   : > { %v433_v45 = vpop.f32.mrf.mxu0  ;;  %v498_v46 = vpop.f32.mrf.mxu1 }
  0xeb   : > { %v1130_v47 = vpop.eup %1129  ;;  %v434_v48 = vadd.f32 %v433_v45, %v1691_v17  ;;  %v499_v49 = vadd.f32 %v498_v46, %v1693_v18 }
  0xec   : > { %v1132_v51 = vpop.eup %1131  ;;  %639 = vmatmul.f32.gmra.mxu2 %v1130_v47 }
  0xed   : > { %1133 = vtanh.f32 %v434_v48  ;;  %704 = vmatmul.f32.gmra.mxu3 %v1132_v51 }
  0xee   : > { %1135 = vtanh.f32 %v499_v49 }
  0xf2   : > { %v436_v52 = vpop.f32.mrf.mxu0  ;;  %v501_v53 = vpop.f32.mrf.mxu1 }
  0xf3   : > { %v1134_v54 = vpop.eup %1133  ;;  %v437_v55 = vadd.f32 %v436_v52, %v1691_v17  ;;  %v502_v56 = vadd.f32 %v501_v53, %v1693_v18 }
  0xf4   : > { %v1136_v57 = vpop.eup %1135  ;;  %642 = vmatmul.f32.gmra.mxu2 %v1134_v54 }
  0xf5   : > { %1137 = vtanh.f32 %v437_v55  ;;  %707 = vmatmul.f32.gmra.mxu3 %v1136_v57 }
  0xf6   : > { %1139 = vtanh.f32 %v502_v56 }
  0xfa   : > { %v439_v58 = vpop.f32.mrf.mxu0  ;;  %v504_v60 = vpop.f32.mrf.mxu1 }
  0xfb   : > { %v1138_v61 = vpop.eup %1137  ;;  %v440_v62 = vadd.f32 %v439_v58, %v1691_v17  ;;  %v505_v63 = vadd.f32 %v504_v60, %v1693_v18 }
  0xfc   : > { %v1140_v0 = vpop.eup %1139  ;;  %645 = vmatmul.f32.gmra.mxu2 %v1138_v61 }
  0xfd   : > { %1141 = vtanh.f32 %v440_v62  ;;  %710 = vmatmul.f32.gmra.mxu3 %v1140_v0 }
  0xfe   : > { %1143 = vtanh.f32 %v505_v63 }
 0x102   : > { %v442_v1 = vpop.f32.mrf.mxu0  ;;  %v507_v3 = vpop.f32.mrf.mxu1 }
 0x103   : > { %v1142_v4 = vpop.eup %1141  ;;  %v443_v5 = vadd.f32 %v442_v1, %v1691_v17  ;;  %v508_v6 = vadd.f32 %v507_v3, %v1693_v18 }
 0x104   : > { %v1144_v7 = vpop.eup %1143  ;;  %648 = vmatmul.f32.gmra.mxu2 %v1142_v4 }
 0x105   : > { %1145 = vtanh.f32 %v443_v5  ;;  %713 = vmatmul.f32.gmra.mxu3 %v1144_v7 }
 0x106   : > { %1147 = vtanh.f32 %v508_v6 }
 0x10a   : > { %v445_v8 = vpop.f32.mrf.mxu0  ;;  %v510_v9 = vpop.f32.mrf.mxu1 }
 0x10b   : > { %v1146_v10 = vpop.eup %1145  ;;  %v446_v12 = vadd.f32 %v445_v8, %v1691_v17  ;;  %v511_v13 = vadd.f32 %v510_v9, %v1693_v18 }
 0x10c   : > { %v1148_v16 = vpop.eup %1147  ;;  %651 = vmatmul.f32.gmra.mxu2 %v1146_v10 }
 0x10d   : > { %1149 = vtanh.f32 %v446_v12  ;;  %716 = vmatmul.f32.gmra.mxu3 %v1148_v16 }
 0x10e   : > { %1151 = vtanh.f32 %v511_v13 }
 0x112   : > { %v448_v19 = vpop.f32.mrf.mxu0  ;;  %v513_v20 = vpop.f32.mrf.mxu1 }
 0x113   : > { %v1150_v21 = vpop.eup %1149  ;;  %v449_v22 = vadd.f32 %v448_v19, %v1691_v17  ;;  %v514_v23 = vadd.f32 %v513_v20, %v1693_v18 }
 0x114   : > { %v1152_v24 = vpop.eup %1151  ;;  %654 = vmatmul.f32.gmra.mxu2 %v1150_v21 }
 0x115   : > { %1153 = vtanh.f32 %v449_v22  ;;  %719 = vmatmul.f32.gmra.mxu3 %v1152_v24  ;;  %v1730_v24 = vld [vmem:[%s1827_s4] ss:$0 sm:$0xff] }
 0x116   : > { %1155 = vtanh.f32 %v514_v23 }
 0x11a   : > { %v451_v25 = vpop.f32.mrf.mxu0  ;;  %v516_v26 = vpop.f32.mrf.mxu1 }
 0x11b   : > { %v1154_v27 = vpop.eup %1153  ;;  %v452_v28 = vadd.f32 %v451_v25, %v1691_v17  ;;  %v517_v29 = vadd.f32 %v516_v26, %v1693_v18 }
 0x11c   : > { %v1156_v30 = vpop.eup %1155  ;;  %657 = vmatmul.f32.gmra.mxu2 %v1154_v27 }
 0x11d   : > { %1157 = vtanh.f32 %v452_v28  ;;  %722 = vmatmul.f32.gmra.mxu3 %v1156_v30 }
 0x11e   : > { %1159 = vtanh.f32 %v517_v29 }
 0x122   : > { %v454_v31 = vpop.f32.mrf.mxu0  ;;  %v519_v42 = vpop.f32.mrf.mxu1 }
 0x123   : > { %v1158_v43 = vpop.eup %1157  ;;  %v455_v44 = vadd.f32 %v454_v31, %v1691_v17  ;;  %v520_v45 = vadd.f32 %v519_v42, %v1693_v18 }
 0x124   : > { %v1160_v46 = vpop.eup %1159  ;;  %660 = vmatmul.f32.gmra.mxu2 %v1158_v43 }
 0x125   : > { %1161 = vtanh.f32 %v455_v44  ;;  %725 = vmatmul.f32.gmra.mxu3 %v1160_v46 }
 0x126   : > { %1163 = vtanh.f32 %v520_v45 }
 0x12a   : > { %v457_v47 = vpop.f32.mrf.mxu0  ;;  %v522_v48 = vpop.f32.mrf.mxu1 }
 0x12b   : > { %v1162_v49 = vpop.eup %1161  ;;  %v458_v51 = vadd.f32 %v457_v47, %v1691_v17  ;;  %v523_v52 = vadd.f32 %v522_v48, %v1693_v18 }
 0x12c   : > { %v1164_v53 = vpop.eup %1163  ;;  %663 = vmatmul.f32.gmra.mxu2 %v1162_v49 }
 0x12d   : > { %1165 = vtanh.f32 %v458_v51  ;;  %728 = vmatmul.f32.gmra.mxu3 %v1164_v53 }
 0x12e   : > { %1167 = vtanh.f32 %v523_v52 }
 0x132   : > { %v460_v54 = vpop.f32.mrf.mxu0  ;;  %v525_v55 = vpop.f32.mrf.mxu1 }
 0x133   : > { %v1166_v56 = vpop.eup %1165  ;;  %v461_v57 = vadd.f32 %v460_v54, %v1691_v17  ;;  %v526_v58 = vadd.f32 %v525_v55, %v1693_v18 }
 0x134   : > { %v1168_v60 = vpop.eup %1167  ;;  %666 = vmatmul.f32.gmra.mxu2 %v1166_v56 }
 0x135   : > { %1169 = vtanh.f32 %v461_v57  ;;  %731 = vmatmul.f32.gmra.mxu3 %v1168_v60 }
 0x136   : > { %1171 = vtanh.f32 %v526_v58 }
 0x13a   : > { %v463_v61 = vpop.f32.mrf.mxu0  ;;  %v528_v62 = vpop.f32.mrf.mxu1 }
 0x13b   : > { %v1170_v63 = vpop.eup %1169  ;;  %v464_v0 = vadd.f32 %v463_v61, %v1691_v17  ;;  %v529_v1 = vadd.f32 %v528_v62, %v1693_v18 }
 0x13c   : > { %v1172_v3 = vpop.eup %1171  ;;  %669 = vmatmul.f32.gmra.mxu2 %v1170_v63 }
 0x13d   : > { %1173 = vtanh.f32 %v464_v0  ;;  %734 = vmatmul.f32.gmra.mxu3 %v1172_v3 }
 0x13e   : > { %1175 = vtanh.f32 %v529_v1 }
 0x142   : > { %v466_v4 = vpop.f32.mrf.mxu0  ;;  %v531_v5 = vpop.f32.mrf.mxu1 }
 0x143   : > { %v1174_v6 = vpop.eup %1173  ;;  %v467_v7 = vadd.f32 %v466_v4, %v1691_v17  ;;  %v532_v8 = vadd.f32 %v531_v5, %v1693_v18 }
 0x144   : > { %v1176_v9 = vpop.eup %1175  ;;  %672 = vmatmul.f32.gmra.mxu2 %v1174_v6 }
 0x145   : > { %1177 = vtanh.f32 %v467_v7  ;;  %737 = vmatmul.f32.gmra.mxu3 %v1176_v9 }
 0x146   : > { %1179 = vtanh.f32 %v532_v8 }
 0x14a   : > { %v469_v10 = vpop.f32.mrf.mxu0  ;;  %v534_v12 = vpop.f32.mrf.mxu1 }
 0x14b   : > { %v1178_v13 = vpop.eup %1177  ;;  %v470_v16 = vadd.f32 %v469_v10, %v1691_v17  ;;  %v535_v19 = vadd.f32 %v534_v12, %v1693_v18 }
 0x14c   : > { %v1180_v20 = vpop.eup %1179  ;;  %675 = vmatmul.f32.gmra.mxu2 %v1178_v13 }
 0x14d   : > { %1181 = vtanh.f32 %v470_v16  ;;  %740 = vmatmul.f32.gmra.mxu3 %v1180_v20 }
 0x14e   : > { %1183 = vtanh.f32 %v535_v19 }
 0x153   : > { %v1182_v21 = vpop.eup %1181 }
 0x154   : > { %v1184_v22 = vpop.eup %1183  ;;  %678 = vmatmul.f32.gmra.mxu2 %v1182_v21 }
 0x155   : > { %743 = vmatmul.f32.gmra.mxu3 %v1184_v22 }
 0x15f   : > { %v634_v23 = vpop.f32.mrf.mxu2 }
 0x160   : > { %v699_v25 = vpop.f32.mrf.mxu3 }
 0x161   : > { %v700_v17 = vadd.f32 %v699_v25, %v634_v23 }
 0x163   : > { %v802_v18 = vadd.f32 %v1730_v24, %v700_v17 }
 0x165   : > { %1185 = vtanh.f32 %v802_v18 }
 0x167   : > { %v637_v26 = vpop.f32.mrf.mxu2 }
 0x168   : > { %v702_v27 = vpop.f32.mrf.mxu3 }
 0x169   : > { %v703_v28 = vadd.f32 %v702_v27, %v637_v26 }
 0x16b   : > { %v1186_v29 = vpop.eup %1185  ;;  %v803_v30 = vadd.f32 %v1730_v24, %v703_v28 }
 0x16c   : > { %v834_v31 = vadd.f32 %v1186_v29, %v1612_v32 }
 0x16d   : > { %1187 = vtanh.f32 %v803_v30 }
 0x16e   : > { %850 = vst [vmem:[%s1737_s3] sm:$0xff] %v834_v31 }
 0x16f   : > { %v640_v42 = vpop.f32.mrf.mxu2 }
 0x170   : > { %v705_v43 = vpop.f32.mrf.mxu3 }
 0x171   : > { %v706_v44 = vadd.f32 %v705_v43, %v640_v42 }
 0x173   : > { %v1188_v45 = vpop.eup %1187  ;;  %v804_v46 = vadd.f32 %v1730_v24, %v706_v44 }
 0x174   : > { %v835_v47 = vadd.f32 %v1188_v45, %v1617_v33 }
 0x175   : > { %1189 = vtanh.f32 %v804_v46 }
 0x176   : > { %851 = vst [vmem:[%s1737_s3 + $0x8] sm:$0xff] %v835_v47 }
 0x177   : > { %v643_v32 = vpop.f32.mrf.mxu2 }
 0x178   : > { %v708_v48 = vpop.f32.mrf.mxu3 }
 0x179   : > { %v709_v49 = vadd.f32 %v708_v48, %v643_v32 }
 0x17b   : > { %v1190_v51 = vpop.eup %1189  ;;  %v805_v52 = vadd.f32 %v1730_v24, %v709_v49 }
 0x17c   : > { %v836_v53 = vadd.f32 %v1190_v51, %v1622_v34 }
 0x17d   : > { %1191 = vtanh.f32 %v805_v52 }
 0x17e   : > { %852 = vst [vmem:[%s1737_s3 + $0x10] sm:$0xff] %v836_v53 }
 0x17f   : > { %v646_v54 = vpop.f32.mrf.mxu2 }
 0x180   : > { %v711_v55 = vpop.f32.mrf.mxu3 }
 0x181   : > { %v712_v56 = vadd.f32 %v711_v55, %v646_v54 }
 0x183   : > { %v1192_v57 = vpop.eup %1191  ;;  %v806_v33 = vadd.f32 %v1730_v24, %v712_v56 }
 0x184   : > { %v837_v58 = vadd.f32 %v1192_v57, %v1627_v35 }
 0x185   : > { %1193 = vtanh.f32 %v806_v33 }
 0x186   : > { %853 = vst [vmem:[%s1737_s3 + $0x18] sm:$0xff] %v837_v58 }
 0x187   : > { %v649_v60 = vpop.f32.mrf.mxu2 }
 0x188   : > { %v714_v61 = vpop.f32.mrf.mxu3 }
 0x189   : > { %v715_v62 = vadd.f32 %v714_v61, %v649_v60 }
 0x18b   : > { %v1194_v63 = vpop.eup %1193  ;;  %v807_v34 = vadd.f32 %v1730_v24, %v715_v62 }
 0x18c   : > { %v838_v0 = vadd.f32 %v1194_v63, %v1632_v36 }
 0x18d   : > { %1195 = vtanh.f32 %v807_v34 }
 0x18e   : > { %854 = vst [vmem:[%s1737_s3 + $0x20] sm:$0xff] %v838_v0 }
 0x18f   : > { %v652_v1 = vpop.f32.mrf.mxu2 }
 0x190   : > { %v717_v3 = vpop.f32.mrf.mxu3 }
 0x191   : > { %v718_v4 = vadd.f32 %v717_v3, %v652_v1 }
 0x193   : > { %v1196_v5 = vpop.eup %1195  ;;  %v808_v35 = vadd.f32 %v1730_v24, %v718_v4 }
 0x194   : > { %v839_v6 = vadd.f32 %v1196_v5, %v1637_v37 }
 0x195   : > { %1197 = vtanh.f32 %v808_v35 }
 0x196   : > { %855 = vst [vmem:[%s1737_s3 + $0x28] sm:$0xff] %v839_v6 }
 0x197   : > { %v655_v7 = vpop.f32.mrf.mxu2 }
 0x198   : > { %v720_v8 = vpop.f32.mrf.mxu3 }
 0x199   : > { %v721_v9 = vadd.f32 %v720_v8, %v655_v7 }
 0x19b   : > { %v1198_v10 = vpop.eup %1197  ;;  %v809_v36 = vadd.f32 %v1730_v24, %v721_v9 }
 0x19c   : > { %v840_v12 = vadd.f32 %v1198_v10, %v1642_v38 }
 0x19d   : > { %1199 = vtanh.f32 %v809_v36 }
 0x19e   : > { %856 = vst [vmem:[%s1737_s3 + $0x30] sm:$0xff] %v840_v12 }
 0x19f   : > { %v658_v13 = vpop.f32.mrf.mxu2 }
 0x1a0   : > { %v723_v16 = vpop.f32.mrf.mxu3 }
 0x1a1   : > { %v724_v19 = vadd.f32 %v723_v16, %v658_v13 }
 0x1a3   : > { %v1200_v20 = vpop.eup %1199  ;;  %v810_v37 = vadd.f32 %v1730_v24, %v724_v19 }
 0x1a4   : > { %v841_v21 = vadd.f32 %v1200_v20, %v1647_v39 }
 0x1a5   : > { %1201 = vtanh.f32 %v810_v37 }
 0x1a6   : > { %857 = vst [vmem:[%s1737_s3 + $0x38] sm:$0xff] %v841_v21 }
 0x1a7   : > { %v661_v22 = vpop.f32.mrf.mxu2 }
 0x1a8   : > { %v726_v23 = vpop.f32.mrf.mxu3 }
 0x1a9   : > { %v727_v25 = vadd.f32 %v726_v23, %v661_v22 }
 0x1ab   : > { %v1202_v17 = vpop.eup %1201  ;;  %v811_v38 = vadd.f32 %v1730_v24, %v727_v25 }
 0x1ac   : > { %v842_v18 = vadd.f32 %v1202_v17, %v1652_v40 }
 0x1ad   : > { %1203 = vtanh.f32 %v811_v38 }
 0x1ae   : > { %858 = vst [vmem:[%s1737_s3 + $0x40] sm:$0xff] %v842_v18 }
 0x1af   : > { %v664_v26 = vpop.f32.mrf.mxu2 }
 0x1b0   : > { %v729_v27 = vpop.f32.mrf.mxu3 }
 0x1b1   : > { %v730_v28 = vadd.f32 %v729_v27, %v664_v26 }
 0x1b3   : > { %v1204_v29 = vpop.eup %1203  ;;  %v812_v39 = vadd.f32 %v1730_v24, %v730_v28 }
 0x1b4   : > { %v843_v30 = vadd.f32 %v1204_v29, %v1657_v41 }
 0x1b5   : > { %1205 = vtanh.f32 %v812_v39 }
 0x1b6   : > { %859 = vst [vmem:[%s1737_s3 + $0x48] sm:$0xff] %v843_v30 }
 0x1b7   : > { %v667_v31 = vpop.f32.mrf.mxu2 }
 0x1b8   : > { %v732_v42 = vpop.f32.mrf.mxu3 }
 0x1b9   : > { %v733_v43 = vadd.f32 %v732_v42, %v667_v31 }
 0x1bb   : > { %v1206_v44 = vpop.eup %1205  ;;  %v813_v40 = vadd.f32 %v1730_v24, %v733_v43 }
 0x1bc   : > { %v844_v45 = vadd.f32 %v1206_v44, %v1662_v50 }
 0x1bd   : > { %1207 = vtanh.f32 %v813_v40 }
 0x1be   : > { %860 = vst [vmem:[%s1737_s3 + $0x50] sm:$0xff] %v844_v45 }
 0x1bf   : > { %v670_v46 = vpop.f32.mrf.mxu2 }
 0x1c0   : > { %v735_v47 = vpop.f32.mrf.mxu3 }
 0x1c1   : > { %v736_v32 = vadd.f32 %v735_v47, %v670_v46 }
 0x1c3   : > { %v1208_v48 = vpop.eup %1207  ;;  %v814_v41 = vadd.f32 %v1730_v24, %v736_v32 }
 0x1c4   : > { %v845_v49 = vadd.f32 %v1208_v48, %v1667_v59 }
 0x1c5   : > { %1209 = vtanh.f32 %v814_v41 }
 0x1c6   : > { %861 = vst [vmem:[%s1737_s3 + $0x58] sm:$0xff] %v845_v49 }
 0x1c7   : > { %v673_v51 = vpop.f32.mrf.mxu2 }
 0x1c8   : > { %v738_v52 = vpop.f32.mrf.mxu3 }
 0x1c9   : > { %v739_v53 = vadd.f32 %v738_v52, %v673_v51 }
 0x1cb   : > { %v1210_v54 = vpop.eup %1209  ;;  %v815_v50 = vadd.f32 %v1730_v24, %v739_v53 }
 0x1cc   : > { %v846_v55 = vadd.f32 %v1210_v54, %v1672_v2 }
 0x1cd   : > { %1211 = vtanh.f32 %v815_v50 }
 0x1ce   : > { %862 = vst [vmem:[%s1737_s3 + $0x60] sm:$0xff] %v846_v55 }
 0x1cf   : > { %v676_v56 = vpop.f32.mrf.mxu2 }
 0x1d0   : > { %v741_v57 = vpop.f32.mrf.mxu3 }
 0x1d1   : > { %v742_v33 = vadd.f32 %v741_v57, %v676_v56 }
 0x1d3   : > { %v1212_v59 = vpop.eup %1211  ;;  %v816_v58 = vadd.f32 %v1730_v24, %v742_v33 }
 0x1d4   : > { %v847_v60 = vadd.f32 %v1212_v59, %v1677_v11 }
 0x1d5   : > { %1213 = vtanh.f32 %v816_v58 }
 0x1d6   : > { %863 = vst [vmem:[%s1737_s3 + $0x68] sm:$0xff] %v847_v60 }
 0x1d7   : > { %v679_v61 = vpop.f32.mrf.mxu2 }
 0x1d8   : > { %v744_v62 = vpop.f32.mrf.mxu3 }
 0x1d9   : > { %v745_v63 = vadd.f32 %v744_v62, %v679_v61 }
 0x1db   : > { %v1214_v2 = vpop.eup %1213  ;;  %v817_v34 = vadd.f32 %v1730_v24, %v745_v63 }
 0x1dc   : > { %v848_v0 = vadd.f32 %v1214_v2, %v1682_v14 }
 0x1dd   : > { %1215 = vtanh.f32 %v817_v34 }
 0x1de   : > { %864 = vst [vmem:[%s1737_s3 + $0x70] sm:$0xff] %v848_v0 }
 0x1e3   : > { %v1216_v11 = vpop.eup %1215 }
 0x1e4   : > { %v849_v1 = vadd.f32 %v1216_v11, %v1687_v15 }
 0x1e6   : > { %865 = vst [vmem:[%s1737_s3 + $0x78] sm:$0xff] %v849_v1 }
 0x1e7   : > { %1364 = shalt.err (!%p1361_p0)
}
 0x1e8   : > { %s1436_s10 = smov 128   ;;  %s1437_s11 = smov 8  }
 0x1e9   : > { %1035 = dma.vmem_to_hbm [thread:$0]  (%p1560_p3), %s880_s7, 2048, %s882_s16, %s867_s21, %s1436_s10, %s1436_s10, %s1437_s11  }
 0x1ea PF: > { %s896_s1 = sand.u32 1, %s1407_s18   ;;  %p1052_p5 = pnand %p1004_p11, %p1517_p6 }
 0x1eb   : > { %s897_s2 = scalar_lea.sflag [#allocation5], %s896_s1 }
 0x1ec   : > { %p1053_p7 = pneg %p1052_p5 }
 0x1ee   : > { %1402 = dma.done.wait (%p1053_p7), %s897_s2, 2048  }
 0x1ef   : > { %1404 = vsyncadd (%p1053_p7), %s897_s2, 4294965248  ;;  %s23_s23 = sadd.s32 1, %s1427_s23   ;;  %s1847_s18 = smov %s1411_s19 }
 0x1f0   : > { %p20_p9 = scmp.ge.s32.totalorder %s23_s23, 4   ;;  %s1848_s19 = smov %s1415_s20 }
 0x1f1   : > { %s1849_s20 = smov %s1576_s27  ;;  %s1850_s21 = smov %s1423_s22 }
 0x1f2   : > { %s1851_s22 = smov %s1853_s15  ;;  %22 = sbr.rel (!%p20_p9) target bundleno = 12 (0xc), region = 108 }
 0x1f7   :  { %903 = vsyncpa [#allocation4], 1 }
 0x1f8   :  { %905 = vsyncpa [#allocation4 + $0x1], 1 }
 0x1f9   :  { %906 = vsyncpa [#allocation7], 1 }
 0x1fa   :  { %907 = vsyncpa [#allocation10], 1 }
 0x1fb   :  { %908 = vsyncpa [#allocation5], 1 }
 0x1fc   :  { %910 = vsyncpa [#allocation5 + $0x1], 1 }

// kernel: tpu_custom_call.1
= control target key start
LH: loop header
LB: loop body
LE: loop exit
PB: predicated region body
PF: predicated region fallthrough
CT: control target
= control target key end

     0   :  { %s1823_s0 = inlined_call_operand.hbm [shape: f32[256,128], index: 0, kind: input, shape index: {}]   ;;  %s1824_s1 = inlined_call_operand.hbm [shape: f32[128,256], index: 1, kind: input, shape index: {}]   ;;  %s1825_s2 = inlined_call_operand.hbm [shape: f32[1,256], index: 2, kind: input, shape index: {}]   ;;  %s1826_s3 = inlined_call_operand.hbm [shape: f32[256,128], index: 3, kind: input, shape index: {}]   ;;  %s1827_s4 = inlined_call_operand.vmem [shape: f32[1,128], index: 4, kind: input, shape index: {}]   ;;  %s1828_s5 = inlined_call_operand.hbm [shape: f32[256,128], index: 5, kind: output, shape index: {}]  }
   0x1   :  { %1831 = sst [smem:[#allocation16_spill]] %s1824_s1 }
   0x2   :  { %1832 = sst [smem:[#allocation17_spill]] %s1825_s2 }
   0x3   :  { %1833 = sst [smem:[#allocation18_spill]] %s1826_s3 }
   0x4   :  { %10 = vsyncpa [#allocation4], 0 }
   0x5   :  { %12 = vsyncpa [#allocation4 + $0x1], 0 }
   0x6   :  { %13 = vsyncpa [#allocation7], 0 }
   0x7   :  { %14 = vsyncpa [#allocation10], 0 }
   0x8   :  { %15 = vsyncpa [#allocation5], 0 }
   0x9   :  { %17 = vsyncpa [#allocation5 + $0x1], 0  ;;  %s1468_s18 = smov 0   ;;  %s1470_s19 = smov 0  }
   0xa   :  { %s1472_s20 = smov 0   ;;  %s1474_s21 = smov 0  }
   0xb   :  { %s1476_s22 = smov 0   ;;  %s1478_s23 = smov 0  }
   0xc LB: > { %s998_s24 = sadd.s32 4294967295, %s1427_s23   ;;  %s999_s25 = sadd.s32 4294967294, %s1427_s23   ;;  %s1427_s23 = sphi %s1478_s23, %s23_s23   ;;  %s1423_s22 = sphi %s1476_s22, %s1851_s22   ;;  %s1419_s21 = sphi %s1474_s21, %s1850_s21   ;;  %s1415_s20 = sphi %s1472_s20, %s1849_s20   ;;  %s1411_s19 = sphi %s1470_s19, %s1848_s19   ;;  %s1407_s18 = sphi %s1468_s18, %s1847_s18  }
   0xd   : > { %p55_p0 = scmp.ne.s32.totalorder %s1411_s19, %s1407_s18  ;;  %p1502_p1 = scmp.eq.s32.totalorder %s998_s24, 0 }
   0xe   : > { %p1506_p2 = scmp.eq.s32.totalorder %s998_s24, 1  ;;  %p184_p3 = scmp.eq.s32.totalorder %s999_s25, 1 }
   0xf   : > { %p1512_p4 = por %p1502_p1, %p55_p0  ;;  %p1000_p5 = scmp.ge.s32.totalorder %s1427_s23, 1 }
  0x10   : > { %p1517_p6 = por %p184_p3, %p55_p0  ;;  %p191_p7 = scmp.lt.s32.totalorder %s1427_s23, 3 }
  0x11   : > { %s1838_s1 = sld [smem:[#allocation16_spill]]  ;;  %s1429_s9 = smov [#allocation6]  }
  0x12   : > { %p1525_p8 = pnand %p1000_p5, %p191_p7  ;;  %s207_s10 = sshll.u32 %s1429_s9, 4  ;;  %s208_s10 = int_to_ptr.vmem [resolvable:$true] %s207_s10 }
  0x13   : > { %p1004_p11 = scmp.ge.s32.totalorder %s1427_s23, 2  ;;  %s1841_s2 = sld [smem:[#allocation17_spill]] }
  0x14   : > { %p1037_p9 = pneg %p1525_p8  ;;  %s1430_s15 = smov 256  }
  0x15   : > { %s1431_s16 = smov 16   ;;  %s1432_s17 = smov [#allocation8]  }
  0x16   : > { %p1533_p10 = pnand %p1037_p9, %p1502_p1  ;;  %s224_s24 = sshll.u32 %s1432_s17, 4  ;;  %s225_s24 = int_to_ptr.vmem [resolvable:$true] %s224_s24 }
  0x17   : > { %s205_s7 = sshll.u32 %s1838_s1, 4  ;;  %s1842_s3 = sld [smem:[#allocation18_spill]]  ;;  %s206_s7 = int_to_ptr.hbm [resolvable:$true] %s205_s7 }
  0x18   : > { %1040 = dma.hbm_to_vmem [thread:$0]  (!%p1533_p10), %s206_s7, 4096, %s208_s10, [#allocation7], %s1430_s15, %s1430_s15, %s1431_s16  }
  0x19   : > { %s222_s14 = sshll.u32 %s1841_s2, 4  ;;  %s1433_s9 = smov [#allocation9]   ;;  %s223_s14 = int_to_ptr.hbm [resolvable:$true] %s222_s14 }
  0x1a   : > { %1043 = dma.hbm_to_vmem [thread:$0]  (!%p1533_p10), %s223_s14, 32, %s225_s24, [#allocation7]  }
  0x1b   : > { %s238_s12 = sshll.u32 %s1433_s9, 4  ;;  %s1829_s13 = smov 128   ;;  %s239_s12 = int_to_ptr.vmem [resolvable:$true] %s238_s12 }
  0x1c   : > { %s1830_s7 = smov 8   ;;  %s42_s10 = sadd.s32 1, %s1415_s20 }
  0x1d   : > { %s236_s6 = sshll.u32 %s1842_s3, 4  ;;  %s35_s15 = sadd.s32 1, %s1423_s22  ;;  %s237_s6 = int_to_ptr.hbm [resolvable:$true] %s236_s6 }
  0x1e   : > { %1046 = dma.hbm_to_vmem [thread:$0]  (!%p1533_p10), %s237_s6, 4096, %s239_s12, [#allocation10], %s1829_s13, %s1829_s13, %s1830_s7  }
  0x1f   : > { %p49_p12 = scmp.ne.s32.totalorder %s1415_s20, %s1411_s19  ;;  %p37_p13 = scmp.ge.s32.totalorder %s35_s15, 2 }
  0x20   : > { %p50_p0 = scmp.eq.s32.totalorder %s1427_s23, 0  ;;  %p1058_p5 = scmp.lt.s32.totalorder %s1427_s23, 2 }
  0x21   : > { %p1560_p3 = por %p1506_p2, %p49_p12  ;;  %s1853_s15 = smov (%p37_p13, %s35_s15), 0 }
  0x22   : > { %p1567_p7 = por %p50_p0, %p49_p12  ;;  %s255_s16 = sand.u32 1, %s1415_s20  }
  0x23   : > { %s39_s17 = ssub.s32 %s1423_s22, %s1853_s15  ;;  %s1005_s24 = sshll.u32 %s255_s16, 7 }
  0x24   : > { %p40_p9 = scmp.eq.s32.totalorder %s39_s17, 0  ;;  %s1019_s25 = sshll.u32 %s1423_s22, 7 }
  0x25   : > { %s264_s9 = scalar_lea.hbm %s1823_s0, %s1019_s25  ;;  %s259_s12 = scalar_lea.vmem [#allocation3], %s1005_s24 }
  0x26   : > { %s1576_s27 = scalar_select %p40_p9, %s1415_s20, %s42_s10  }
  0x27   : > { %s267_s13 = sshll.u32 %s259_s12, 4  ;;  %s265_s7 = sshll.u32 %s264_s9, 4  ;;  %s268_s13 = int_to_ptr.vmem [resolvable:$true] %s267_s13  ;;  %s266_s7 = int_to_ptr.hbm [resolvable:$true] %s265_s7 }
  0x28   : > { %p1048_p2 = pnand %p1058_p5, %p1567_p7  ;;  %s256_s1 = scalar_lea.sflag [#allocation4], %s255_s16 }
  0x29   : > { %s1845_s2 = smov 8   ;;  %s1846_s3 = smov 128  }
  0x2a   : > { %1050 = dma.hbm_to_vmem [thread:$0]  (!%p1048_p2), %s266_s7, 2048, %s268_s13, %s256_s1, %s1846_s3, %s1846_s3, %s1845_s2  }
  0x2b   : > { %279 = sbr.rel (%p1525_p8) target bundleno = 490 (0x1ea), region = 40  ;;  %s1591_s10 = sand.u32 (!%p1525_p8), 1, %s1411_s19  }
  0x2c   : > { %s1009_s17 = sshll.u32 (!%p1525_p8), %s1591_s10, 7  ;;  %s282_s24 = scalar_lea.sflag (!%p1525_p8), [#allocation4], %s1591_s10 }
  0x2d   : > { %s1597_s11 = scalar_lea.vmem (!%p1525_p8), [#allocation3], %s1009_s17 }
  0x30   : > { %1390 = dma.done.wait (%p1512_p4), %s282_s24, 2048  }
  0x31   : > { %1392 = vsyncadd (%p1512_p4), %s282_s24, 4294965248 }
  0x32   : > { %1394 = dma.done.wait (%p1502_p1), [#allocation7], 4128  }
  0x33   : > { %1396 = vsyncadd (%p1502_p1), [#allocation7], 4294963168 }
  0x34   : > { %1398 = dma.done.wait (%p1502_p1), [#allocation10], 4096  }
  0x35   : > { %1400 = vsyncadd (%p1502_p1), [#allocation10], 4294963200  ;;  %v399_v0 = vld [vmem:[#allocation6 + $0xf0] sm:$0xff]  ;;  %v400_v1 = vld [vmem:[#allocation6 + $0xf8] sm:$0xff]  ;;  %s1737_s3 = scalar_lea.vmem [#allocation11], %s1009_s17  ;;  %s1020_s26 = sshll.u32 %s1419_s21, 7 }
  0x36   : > { %v397_v2 = vld [vmem:[#allocation6 + $0xe0] sm:$0xff]  ;;  %407 = vmatpush.msra.mxu0 %v399_v0  ;;  %472 = vmatpush.msra.mxu1 %v400_v1  ;;  %v398_v3 = vld [vmem:[#allocation6 + $0xe8] sm:$0xff]  ;;  %v395_v4 = vld [vmem:[#allocation6 + $0xd0] sm:$0xff]  ;;  %s878_s13 = scalar_lea.hbm %s1828_s5, %s1020_s26  ;;  %s879_s7 = sshll.u32 %s1737_s3, 4  ;;  %s880_s7 = int_to_ptr.vmem [resolvable:$true] %s879_s7 }
  0x37   : > { %v396_v5 = vld [vmem:[#allocation6 + $0xd8] sm:$0xff]  ;;  %v393_v6 = vld [vmem:[#allocation6 + $0xc0] sm:$0xff]  ;;  %v394_v7 = vld [vmem:[#allocation6 + $0xc8] sm:$0xff]  ;;  %s881_s16 = sshll.u32 %s878_s13, 4  ;;  %s867_s21 = scalar_lea.sflag [#allocation5], %s1591_s10  ;;  %s882_s16 = int_to_ptr.hbm [resolvable:$true] %s881_s16 }
  0x38   : > { %408 = vmatpush.msra.mxu0 %v397_v2  ;;  %473 = vmatpush.msra.mxu1 %v398_v3  ;;  %v391_v8 = vld [vmem:[#allocation6 + $0xb0] sm:$0xff]  ;;  %v392_v9 = vld [vmem:[#allocation6 + $0xb8] sm:$0xff]  ;;  %v389_v10 = vld [vmem:[#allocation6 + $0xa0] sm:$0xff]  ;;  %s1351_s25 = sshra.s32 %s882_s16, 4  ;;  %s1357_s12 = scalar_lea.hbm %s1828_s5, 256  ;;  %s1352_s25 = int_to_ptr.hbm [resolvable:$true] %s1351_s25 }
  0x39   : > { %v390_v11 = vld [vmem:[#allocation6 + $0xa8] sm:$0xff]  ;;  %v387_v12 = vld [vmem:[#allocation6 + $0x90] sm:$0xff]  ;;  %v388_v13 = vld [vmem:[#allocation6 + $0x98] sm:$0xff]  ;;  %s1353_s30 = scalar_lea.hbm %s1352_s25, 128  ;;  %p1358_p10 = scmp.lt.s32.totalorder %s1352_s25, %s1828_s5 }
  0x3a   : > { %409 = vmatpush.msra.mxu0 %v395_v4  ;;  %474 = vmatpush.msra.mxu1 %v396_v5  ;;  %v385_v14 = vld [vmem:[#allocation6 + $0x80] sm:$0xff]  ;;  %v386_v15 = vld [vmem:[#allocation6 + $0x88] sm:$0xff]  ;;  %v383_v16 = vld [vmem:[#allocation6 + $0x70] sm:$0xff]  ;;  %p1354_p1 = scmp.ne.s32.totalorder %s1352_s25, %s1353_s30  ;;  %p1359_p12 = scmp.lt.s32.totalorder %s1357_s12, %s1353_s30 }
  0x3b   : > { %v384_v17 = vld [vmem:[#allocation6 + $0x78] sm:$0xff]  ;;  %v381_v18 = vld [vmem:[#allocation6 + $0x60] sm:$0xff]  ;;  %v382_v19 = vld [vmem:[#allocation6 + $0x68] sm:$0xff] }
  0x3c   : > { %410 = vmatpush.msra.mxu0 %v393_v6  ;;  %475 = vmatpush.msra.mxu1 %v394_v7  ;;  %v379_v20 = vld [vmem:[#allocation6 + $0x50] sm:$0xff]  ;;  %v380_v21 = vld [vmem:[#allocation6 + $0x58] sm:$0xff]  ;;  %v377_v22 = vld [vmem:[#allocation6 + $0x40] sm:$0xff]  ;;  %p1355_p4 = pnand %p1354_p1, %p1560_p3  ;;  %p1360_p13 = por %p1359_p12, %p1358_p10 }
  0x3d   : > { %v378_v23 = vld [vmem:[#allocation6 + $0x48] sm:$0xff]  ;;  %v375_v24 = vld [vmem:[#allocation6 + $0x30] sm:$0xff]  ;;  %v376_v25 = vld [vmem:[#allocation6 + $0x38] sm:$0xff] }
  0x3e   : > { %411 = vmatpush.msra.mxu0 %v391_v8  ;;  %476 = vmatpush.msra.mxu1 %v392_v9  ;;  %v373_v26 = vld [vmem:[#allocation6 + $0x20] sm:$0xff]  ;;  %v374_v27 = vld [vmem:[#allocation6 + $0x28] sm:$0xff]  ;;  %v371_v28 = vld [vmem:[#allocation6 + $0x10] sm:$0xff]  ;;  %p1356_p8 = pneg %p1355_p4 }
  0x3f   : > { %v372_v29 = vld [vmem:[#allocation6 + $0x18] sm:$0xff]  ;;  %v369_v30 = vld [vmem:[#allocation6] sm:$0xff]  ;;  %v370_v31 = vld [vmem:[#allocation6 + $0x8] sm:$0xff] }
  0x40   : > { %412 = vmatpush.msra.mxu0 %v389_v10  ;;  %477 = vmatpush.msra.mxu1 %v390_v11  ;;  %v1612_v32 = vld [vmem:[%s1597_s11] sm:$0xff]  ;;  %v1617_v33 = vld [vmem:[%s1597_s11 + $0x8] sm:$0xff]  ;;  %v1622_v34 = vld [vmem:[%s1597_s11 + $0x10] sm:$0xff]  ;;  %p1361_p0 = pnand %p1360_p13, %p1356_p8 }
  0x41   : > { %v1627_v35 = vld [vmem:[%s1597_s11 + $0x18] sm:$0xff]  ;;  %v1632_v36 = vld [vmem:[%s1597_s11 + $0x20] sm:$0xff]  ;;  %v1637_v37 = vld [vmem:[%s1597_s11 + $0x28] sm:$0xff] }
  0x42   : > { %413 = vmatpush.msra.mxu0 %v387_v12  ;;  %478 = vmatpush.msra.mxu1 %v388_v13  ;;  %v1642_v38 = vld [vmem:[%s1597_s11 + $0x30] sm:$0xff]  ;;  %v1647_v39 = vld [vmem:[%s1597_s11 + $0x38] sm:$0xff]  ;;  %v1652_v40 = vld [vmem:[%s1597_s11 + $0x40] sm:$0xff] }
  0x43   : > { %v1657_v41 = vld [vmem:[%s1597_s11 + $0x48] sm:$0xff]  ;;  %v584_v42 = vld [vmem:[#allocation9 + $0x78] sm:$0xff]  ;;  %v583_v44 = vld [vmem:[#allocation9 + $0x70] sm:$0xff] }
  0x44   : > { %414 = vmatpush.msra.mxu0 %v385_v14  ;;  %479 = vmatpush.msra.mxu1 %v386_v15  ;;  %v600_v43 = vld [vmem:[#allocation9 + $0xf8] sm:$0xff]  ;;  %v599_v45 = vld [vmem:[#allocation9 + $0xf0] sm:$0xff]  ;;  %v582_v46 = vld [vmem:[#allocation9 + $0x68] sm:$0xff] }
  0x45   : > { %617 = vmatpush.msra.mxu2 %v584_v42  ;;  %682 = vmatpush.msra.mxu3 %v600_v43  ;;  %v598_v47 = vld [vmem:[#allocation9 + $0xe8] sm:$0xff]  ;;  %v581_v48 = vld [vmem:[#allocation9 + $0x60] sm:$0xff]  ;;  %v580_v51 = vld [vmem:[#allocation9 + $0x58] sm:$0xff] }
  0x46   : > { %415 = vmatpush.msra.mxu0 %v383_v16  ;;  %480 = vmatpush.msra.mxu1 %v384_v17  ;;  %v597_v49 = vld [vmem:[#allocation9 + $0xe0] sm:$0xff]  ;;  %v1662_v50 = vld [vmem:[%s1597_s11 + $0x50] sm:$0xff]  ;;  %v596_v52 = vld [vmem:[#allocation9 + $0xd8] sm:$0xff] }
  0x47   : > { %618 = vmatpush.msra.mxu2 %v583_v44  ;;  %683 = vmatpush.msra.mxu3 %v599_v45  ;;  %v579_v53 = vld [vmem:[#allocation9 + $0x50] sm:$0xff]  ;;  %v578_v55 = vld [vmem:[#allocation9 + $0x48] sm:$0xff]  ;;  %v577_v57 = vld [vmem:[#allocation9 + $0x40] sm:$0xff] }
  0x48   : > { %416 = vmatpush.msra.mxu0 %v381_v18  ;;  %481 = vmatpush.msra.mxu1 %v382_v19  ;;  %v595_v54 = vld [vmem:[#allocation9 + $0xd0] sm:$0xff]  ;;  %v594_v56 = vld [vmem:[#allocation9 + $0xc8] sm:$0xff]  ;;  %v593_v58 = vld [vmem:[#allocation9 + $0xc0] sm:$0xff] }
  0x49   : > { %619 = vmatpush.msra.mxu2 %v582_v46  ;;  %684 = vmatpush.msra.mxu3 %v598_v47  ;;  %v1667_v59 = vld [vmem:[%s1597_s11 + $0x58] sm:$0xff]  ;;  %v574_v0 = vld [vmem:[#allocation9 + $0x28] sm:$0xff]  ;;  %v1672_v2 = vld [vmem:[%s1597_s11 + $0x60] sm:$0xff] }
  0x4a   : > { %417 = vmatpush.msra.mxu0 %v379_v20  ;;  %482 = vmatpush.msra.mxu1 %v380_v21  ;;  %v576_v60 = vld [vmem:[#allocation9 + $0x38] sm:$0xff]  ;;  %v575_v62 = vld [vmem:[#allocation9 + $0x30] sm:$0xff]  ;;  %v590_v1 = vld [vmem:[#allocation9 + $0xa8] sm:$0xff] }
  0x4b   : > { %620 = vmatpush.msra.mxu2 %v581_v48  ;;  %685 = vmatpush.msra.mxu3 %v597_v49  ;;  %v592_v61 = vld [vmem:[#allocation9 + $0xb8] sm:$0xff]  ;;  %v591_v63 = vld [vmem:[#allocation9 + $0xb0] sm:$0xff]  ;;  %v573_v3 = vld [vmem:[#allocation9 + $0x20] sm:$0xff] }
  0x4c   : > { %418 = vmatpush.msra.mxu0 %v377_v22  ;;  %483 = vmatpush.msra.mxu1 %v378_v23  ;;  %v589_v4 = vld [vmem:[#allocation9 + $0xa0] sm:$0xff]  ;;  %v572_v5 = vld [vmem:[#allocation9 + $0x18] sm:$0xff]  ;;  %v571_v7 = vld [vmem:[#allocation9 + $0x10] sm:$0xff] }
  0x4d   : > { %621 = vmatpush.msra.mxu2 %v580_v51  ;;  %686 = vmatpush.msra.mxu3 %v596_v52  ;;  %v588_v6 = vld [vmem:[#allocation9 + $0x98] sm:$0xff]  ;;  %v587_v8 = vld [vmem:[#allocation9 + $0x90] sm:$0xff]  ;;  %v570_v9 = vld [vmem:[#allocation9 + $0x8] sm:$0xff] }
  0x4e   : > { %419 = vmatpush.msra.mxu0 %v375_v24  ;;  %484 = vmatpush.msra.mxu1 %v376_v25  ;;  %v586_v10 = vld [vmem:[#allocation9 + $0x88] sm:$0xff]  ;;  %v569_v12 = vld [vmem:[#allocation9] sm:$0xff]  ;;  %v1687_v15 = vld [vmem:[%s1597_s11 + $0x78] sm:$0xff] }
  0x4f   : > { %622 = vmatpush.msra.mxu2 %v579_v53  ;;  %687 = vmatpush.msra.mxu3 %v595_v54  ;;  %v1677_v11 = vld [vmem:[%s1597_s11 + $0x68] sm:$0xff]  ;;  %v1682_v14 = vld [vmem:[%s1597_s11 + $0x70] sm:$0xff]  ;;  %v401_v16 = vld [vmem:[#allocation8] sm:$0x3] }
  0x50   : > { %420 = vmatpush.msra.mxu0 %v373_v26  ;;  %485 = vmatpush.msra.mxu1 %v374_v27  ;;  %v585_v13 = vld [vmem:[#allocation9 + $0x80] sm:$0xff]  ;;  %v1691_v17 = vperm.slane %v401_v16, 0  ;;  %v1693_v18 = vperm.slane %v401_v16, 1 }
  0x51   : > { %623 = vmatpush.msra.mxu2 %v578_v55  ;;  %688 = vmatpush.msra.mxu3 %v594_v56 }
  0x52   : > { %421 = vmatpush.msra.mxu0 %v371_v28  ;;  %486 = vmatpush.msra.mxu1 %v372_v29 }
  0x53   : > { %624 = vmatpush.msra.mxu2 %v577_v57  ;;  %689 = vmatpush.msra.mxu3 %v593_v58 }
  0x54   : > { %422 = vmatpush.msra.mxu0 %v369_v30  ;;  %487 = vmatpush.msra.mxu1 %v370_v31 }
  0x55   : > { %423 = vmatmul.f32.vlgmr.msra.gmra.mxu0 %v1612_v32  ;;  %488 = vmatmul.f32.vlgmr.msra.gmra.mxu1 %v1612_v32 }
  0x56   : > { %625 = vmatpush.msra.mxu2 %v576_v60  ;;  %690 = vmatpush.msra.mxu3 %v592_v61 }
  0x58   : > { %626 = vmatpush.msra.mxu2 %v575_v62  ;;  %691 = vmatpush.msra.mxu3 %v591_v63 }
  0x5a   : > { %627 = vmatpush.msra.mxu2 %v574_v0  ;;  %692 = vmatpush.msra.mxu3 %v590_v1 }
  0x5c   : > { %628 = vmatpush.msra.mxu2 %v573_v3  ;;  %693 = vmatpush.msra.mxu3 %v589_v4 }
  0x5d   : > { %426 = vmatmul.f32.gmra.mxu0 %v1617_v33  ;;  %491 = vmatmul.f32.gmra.mxu1 %v1617_v33 }
  0x5e   : > { %629 = vmatpush.msra.mxu2 %v572_v5  ;;  %694 = vmatpush.msra.mxu3 %v588_v6 }
  0x60   : > { %630 = vmatpush.msra.mxu2 %v571_v7  ;;  %695 = vmatpush.msra.mxu3 %v587_v8 }
  0x62   : > { %631 = vmatpush.msra.mxu2 %v570_v9  ;;  %696 = vmatpush.msra.mxu3 %v586_v10 }
  0x64   : > { %632 = vmatpush.msra.mxu2 %v569_v12  ;;  %697 = vmatpush.msra.mxu3 %v585_v13 }
  0x65   : > { %429 = vmatmul.f32.gmra.mxu0 %v1622_v34  ;;  %494 = vmatmul.f32.gmra.mxu1 %v1622_v34 }
  0x6d   : > { %432 = vmatmul.f32.gmra.mxu0 %v1627_v35  ;;  %497 = vmatmul.f32.gmra.mxu1 %v1627_v35 }
  0x75   : > { %435 = vmatmul.f32.gmra.mxu0 %v1632_v36  ;;  %500 = vmatmul.f32.gmra.mxu1 %v1632_v36 }
  0x7d   : > { %438 = vmatmul.f32.gmra.mxu0 %v1637_v37  ;;  %503 = vmatmul.f32.gmra.mxu1 %v1637_v37 }
  0x85   : > { %441 = vmatmul.f32.gmra.mxu0 %v1642_v38  ;;  %506 = vmatmul.f32.gmra.mxu1 %v1642_v38 }
  0x8d   : > { %444 = vmatmul.f32.gmra.mxu0 %v1647_v39  ;;  %509 = vmatmul.f32.gmra.mxu1 %v1647_v39 }
  0x95   : > { %447 = vmatmul.f32.gmra.mxu0 %v1652_v40  ;;  %512 = vmatmul.f32.gmra.mxu1 %v1652_v40 }
  0x9d   : > { %450 = vmatmul.f32.gmra.mxu0 %v1657_v41  ;;  %515 = vmatmul.f32.gmra.mxu1 %v1657_v41 }
  0xa5   : > { %453 = vmatmul.f32.gmra.mxu0 %v1662_v50  ;;  %518 = vmatmul.f32.gmra.mxu1 %v1662_v50 }
  0xad   : > { %456 = vmatmul.f32.gmra.mxu0 %v1667_v59  ;;  %521 = vmatmul.f32.gmra.mxu1 %v1667_v59 }
  0xb5   : > { %459 = vmatmul.f32.gmra.mxu0 %v1672_v2  ;;  %524 = vmatmul.f32.gmra.mxu1 %v1672_v2 }
  0xbd   : > { %462 = vmatmul.f32.gmra.mxu0 %v1677_v11  ;;  %527 = vmatmul.f32.gmra.mxu1 %v1677_v11 }
  0xc5   : > { %465 = vmatmul.f32.gmra.mxu0 %v1682_v14  ;;  %530 = vmatmul.f32.gmra.mxu1 %v1682_v14 }
  0xcd   : > { %468 = vmatmul.f32.gmra.mxu0 %v1687_v15  ;;  %533 = vmatmul.f32.gmra.mxu1 %v1687_v15 }
  0xd2   : > { %v424_v19 = vpop.f32.mrf.mxu0  ;;  %v489_v20 = vpop.f32.mrf.mxu1 }
  0xd3   : > { %v425_v21 = vadd.f32 %v424_v19, %v1691_v17  ;;  %v490_v22 = vadd.f32 %v489_v20, %v1693_v18 }
  0xd5   : > { %1121 = vtanh.f32 %v425_v21 }
  0xd6   : > { %1123 = vtanh.f32 %v490_v22 }
  0xda   : > { %v427_v23 = vpop.f32.mrf.mxu0  ;;  %v492_v24 = vpop.f32.mrf.mxu1 }
  0xdb   : > { %v1122_v25 = vpop.eup %1121  ;;  %v428_v26 = vadd.f32 %v427_v23, %v1691_v17  ;;  %v493_v27 = vadd.f32 %v492_v24, %v1693_v18 }
  0xdc   : > { %v1124_v28 = vpop.eup %1123  ;;  %633 = vmatmul.f32.vlgmr.msra.gmra.mxu2 %v1122_v25 }
  0xdd   : > { %1125 = vtanh.f32 %v428_v26  ;;  %698 = vmatmul.f32.vlgmr.msra.gmra.mxu3 %v1124_v28 }
  0xde   : > { %1127 = vtanh.f32 %v493_v27 }
  0xe2   : > { %v430_v29 = vpop.f32.mrf.mxu0  ;;  %v495_v30 = vpop.f32.mrf.mxu1 }
  0xe3   : > { %v1126_v31 = vpop.eup %1125  ;;  %v431_v42 = vadd.f32 %v430_v29, %v1691_v17  ;;  %v496_v43 = vadd.f32 %v495_v30, %v1693_v18 }
  0xe4   : > { %v1128_v44 = vpop.eup %1127  ;;  %636 = vmatmul.f32.gmra.mxu2 %v1126_v31 }
  0xe5   : > { %1129 = vtanh.f32 %v431_v42  ;;  %701 = vmatmul.f32.gmra.mxu3 %v1128_v44 }
  0xe6   : > { %1131 = vtanh.f32 %v496_v43 }
  0xea   : > { %v433_v45 = vpop.f32.mrf.mxu0  ;;  %v498_v46 = vpop.f32.mrf.mxu1 }
  0xeb   : > { %v1130_v47 = vpop.eup %1129  ;;  %v434_v48 = vadd.f32 %v433_v45, %v1691_v17  ;;  %v499_v49 = vadd.f32 %v498_v46, %v1693_v18 }
  0xec   : > { %v1132_v51 = vpop.eup %1131  ;;  %639 = vmatmul.f32.gmra.mxu2 %v1130_v47 }
  0xed   : > { %1133 = vtanh.f32 %v434_v48  ;;  %704 = vmatmul.f32.gmra.mxu3 %v1132_v51 }
  0xee   : > { %1135 = vtanh.f32 %v499_v49 }
  0xf2   : > { %v436_v52 = vpop.f32.mrf.mxu0  ;;  %v501_v53 = vpop.f32.mrf.mxu1 }
  0xf3   : > { %v1134_v54 = vpop.eup %1133  ;;  %v437_v55 = vadd.f32 %v436_v52, %v1691_v17  ;;  %v502_v56 = vadd.f32 %v501_v53, %v1693_v18 }
  0xf4   : > { %v1136_v57 = vpop.eup %1135  ;;  %642 = vmatmul.f32.gmra.mxu2 %v1134_v54 }
  0xf5   : > { %1137 = vtanh.f32 %v437_v55  ;;  %707 = vmatmul.f32.gmra.mxu3 %v1136_v57 }
  0xf6   : > { %1139 = vtanh.f32 %v502_v56 }
  0xfa   : > { %v439_v58 = vpop.f32.mrf.mxu0  ;;  %v504_v60 = vpop.f32.mrf.mxu1 }
  0xfb   : > { %v1138_v61 = vpop.eup %1137  ;;  %v440_v62 = vadd.f32 %v439_v58, %v1691_v17  ;;  %v505_v63 = vadd.f32 %v504_v60, %v1693_v18 }
  0xfc   : > { %v1140_v0 = vpop.eup %1139  ;;  %645 = vmatmul.f32.gmra.mxu2 %v1138_v61 }
  0xfd   : > { %1141 = vtanh.f32 %v440_v62  ;;  %710 = vmatmul.f32.gmra.mxu3 %v1140_v0 }
  0xfe   : > { %1143 = vtanh.f32 %v505_v63 }
 0x102   : > { %v442_v1 = vpop.f32.mrf.mxu0  ;;  %v507_v3 = vpop.f32.mrf.mxu1 }
 0x103   : > { %v1142_v4 = vpop.eup %1141  ;;  %v443_v5 = vadd.f32 %v442_v1, %v1691_v17  ;;  %v508_v6 = vadd.f32 %v507_v3, %v1693_v18 }
 0x104   : > { %v1144_v7 = vpop.eup %1143  ;;  %648 = vmatmul.f32.gmra.mxu2 %v1142_v4 }
 0x105   : > { %1145 = vtanh.f32 %v443_v5  ;;  %713 = vmatmul.f32.gmra.mxu3 %v1144_v7 }
 0x106   : > { %1147 = vtanh.f32 %v508_v6 }
 0x10a   : > { %v445_v8 = vpop.f32.mrf.mxu0  ;;  %v510_v9 = vpop.f32.mrf.mxu1 }
 0x10b   : > { %v1146_v10 = vpop.eup %1145  ;;  %v446_v12 = vadd.f32 %v445_v8, %v1691_v17  ;;  %v511_v13 = vadd.f32 %v510_v9, %v1693_v18 }
 0x10c   : > { %v1148_v16 = vpop.eup %1147  ;;  %651 = vmatmul.f32.gmra.mxu2 %v1146_v10 }
 0x10d   : > { %1149 = vtanh.f32 %v446_v12  ;;  %716 = vmatmul.f32.gmra.mxu3 %v1148_v16 }
 0x10e   : > { %1151 = vtanh.f32 %v511_v13 }
 0x112   : > { %v448_v19 = vpop.f32.mrf.mxu0  ;;  %v513_v20 = vpop.f32.mrf.mxu1 }
 0x113   : > { %v1150_v21 = vpop.eup %1149  ;;  %v449_v22 = vadd.f32 %v448_v19, %v1691_v17  ;;  %v514_v23 = vadd.f32 %v513_v20, %v1693_v18 }
 0x114   : > { %v1152_v24 = vpop.eup %1151  ;;  %654 = vmatmul.f32.gmra.mxu2 %v1150_v21 }
 0x115   : > { %1153 = vtanh.f32 %v449_v22  ;;  %719 = vmatmul.f32.gmra.mxu3 %v1152_v24  ;;  %v1730_v24 = vld [vmem:[%s1827_s4] ss:$0 sm:$0xff] }
 0x116   : > { %1155 = vtanh.f32 %v514_v23 }
 0x11a   : > { %v451_v25 = vpop.f32.mrf.mxu0  ;;  %v516_v26 = vpop.f32.mrf.mxu1 }
 0x11b   : > { %v1154_v27 = vpop.eup %1153  ;;  %v452_v28 = vadd.f32 %v451_v25, %v1691_v17  ;;  %v517_v29 = vadd.f32 %v516_v26, %v1693_v18 }
 0x11c   : > { %v1156_v30 = vpop.eup %1155  ;;  %657 = vmatmul.f32.gmra.mxu2 %v1154_v27 }
 0x11d   : > { %1157 = vtanh.f32 %v452_v28  ;;  %722 = vmatmul.f32.gmra.mxu3 %v1156_v30 }
 0x11e   : > { %1159 = vtanh.f32 %v517_v29 }
 0x122   : > { %v454_v31 = vpop.f32.mrf.mxu0  ;;  %v519_v42 = vpop.f32.mrf.mxu1 }
 0x123   : > { %v1158_v43 = vpop.eup %1157  ;;  %v455_v44 = vadd.f32 %v454_v31, %v1691_v17  ;;  %v520_v45 = vadd.f32 %v519_v42, %v1693_v18 }
 0x124   : > { %v1160_v46 = vpop.eup %1159  ;;  %660 = vmatmul.f32.gmra.mxu2 %v1158_v43 }
 0x125   : > { %1161 = vtanh.f32 %v455_v44  ;;  %725 = vmatmul.f32.gmra.mxu3 %v1160_v46 }
 0x126   : > { %1163 = vtanh.f32 %v520_v45 }
 0x12a   : > { %v457_v47 = vpop.f32.mrf.mxu0  ;;  %v522_v48 = vpop.f32.mrf.mxu1 }
 0x12b   : > { %v1162_v49 = vpop.eup %1161  ;;  %v458_v51 = vadd.f32 %v457_v47, %v1691_v17  ;;  %v523_v52 = vadd.f32 %v522_v48, %v1693_v18 }
 0x12c   : > { %v1164_v53 = vpop.eup %1163  ;;  %663 = vmatmul.f32.gmra.mxu2 %v1162_v49 }
 0x12d   : > { %1165 = vtanh.f32 %v458_v51  ;;  %728 = vmatmul.f32.gmra.mxu3 %v1164_v53 }
 0x12e   : > { %1167 = vtanh.f32 %v523_v52 }
 0x132   : > { %v460_v54 = vpop.f32.mrf.mxu0  ;;  %v525_v55 = vpop.f32.mrf.mxu1 }
 0x133   : > { %v1166_v56 = vpop.eup %1165  ;;  %v461_v57 = vadd.f32 %v460_v54, %v1691_v17  ;;  %v526_v58 = vadd.f32 %v525_v55, %v1693_v18 }
 0x134   : > { %v1168_v60 = vpop.eup %1167  ;;  %666 = vmatmul.f32.gmra.mxu2 %v1166_v56 }
 0x135   : > { %1169 = vtanh.f32 %v461_v57  ;;  %731 = vmatmul.f32.gmra.mxu3 %v1168_v60 }
 0x136   : > { %1171 = vtanh.f32 %v526_v58 }
 0x13a   : > { %v463_v61 = vpop.f32.mrf.mxu0  ;;  %v528_v62 = vpop.f32.mrf.mxu1 }
 0x13b   : > { %v1170_v63 = vpop.eup %1169  ;;  %v464_v0 = vadd.f32 %v463_v61, %v1691_v17  ;;  %v529_v1 = vadd.f32 %v528_v62, %v1693_v18 }
 0x13c   : > { %v1172_v3 = vpop.eup %1171  ;;  %669 = vmatmul.f32.gmra.mxu2 %v1170_v63 }
 0x13d   : > { %1173 = vtanh.f32 %v464_v0  ;;  %734 = vmatmul.f32.gmra.mxu3 %v1172_v3 }
 0x13e   : > { %1175 = vtanh.f32 %v529_v1 }
 0x142   : > { %v466_v4 = vpop.f32.mrf.mxu0  ;;  %v531_v5 = vpop.f32.mrf.mxu1 }
 0x143   : > { %v1174_v6 = vpop.eup %1173  ;;  %v467_v7 = vadd.f32 %v466_v4, %v1691_v17  ;;  %v532_v8 = vadd.f32 %v531_v5, %v1693_v18 }
 0x144   : > { %v1176_v9 = vpop.eup %1175  ;;  %672 = vmatmul.f32.gmra.mxu2 %v1174_v6 }
 0x145   : > { %1177 = vtanh.f32 %v467_v7  ;;  %737 = vmatmul.f32.gmra.mxu3 %v1176_v9 }
 0x146   : > { %1179 = vtanh.f32 %v532_v8 }
 0x14a   : > { %v469_v10 = vpop.f32.mrf.mxu0  ;;  %v534_v12 = vpop.f32.mrf.mxu1 }
 0x14b   : > { %v1178_v13 = vpop.eup %1177  ;;  %v470_v16 = vadd.f32 %v469_v10, %v1691_v17  ;;  %v535_v19 = vadd.f32 %v534_v12, %v1693_v18 }
 0x14c   : > { %v1180_v20 = vpop.eup %1179  ;;  %675 = vmatmul.f32.gmra.mxu2 %v1178_v13 }
 0x14d   : > { %1181 = vtanh.f32 %v470_v16  ;;  %740 = vmatmul.f32.gmra.mxu3 %v1180_v20 }
 0x14e   : > { %1183 = vtanh.f32 %v535_v19 }
 0x153   : > { %v1182_v21 = vpop.eup %1181 }
 0x154   : > { %v1184_v22 = vpop.eup %1183  ;;  %678 = vmatmul.f32.gmra.mxu2 %v1182_v21 }
 0x155   : > { %743 = vmatmul.f32.gmra.mxu3 %v1184_v22 }
 0x15f   : > { %v634_v23 = vpop.f32.mrf.mxu2 }
 0x160   : > { %v699_v25 = vpop.f32.mrf.mxu3 }
 0x161   : > { %v700_v17 = vadd.f32 %v699_v25, %v634_v23 }
 0x163   : > { %v802_v18 = vadd.f32 %v1730_v24, %v700_v17 }
 0x165   : > { %1185 = vtanh.f32 %v802_v18 }
 0x167   : > { %v637_v26 = vpop.f32.mrf.mxu2 }
 0x168   : > { %v702_v27 = vpop.f32.mrf.mxu3 }
 0x169   : > { %v703_v28 = vadd.f32 %v702_v27, %v637_v26 }
 0x16b   : > { %v1186_v29 = vpop.eup %1185  ;;  %v803_v30 = vadd.f32 %v1730_v24, %v703_v28 }
 0x16c   : > { %v834_v31 = vadd.f32 %v1186_v29, %v1612_v32 }
 0x16d   : > { %1187 = vtanh.f32 %v803_v30 }
 0x16e   : > { %850 = vst [vmem:[%s1737_s3] sm:$0xff] %v834_v31 }
 0x16f   : > { %v640_v42 = vpop.f32.mrf.mxu2 }
 0x170   : > { %v705_v43 = vpop.f32.mrf.mxu3 }
 0x171   : > { %v706_v44 = vadd.f32 %v705_v43, %v640_v42 }
 0x173   : > { %v1188_v45 = vpop.eup %1187  ;;  %v804_v46 = vadd.f32 %v1730_v24, %v706_v44 }
 0x174   : > { %v835_v47 = vadd.f32 %v1188_v45, %v1617_v33 }
 0x175   : > { %1189 = vtanh.f32 %v804_v46 }
 0x176   : > { %851 = vst [vmem:[%s1737_s3 + $0x8] sm:$0xff] %v835_v47 }
 0x177   : > { %v643_v32 = vpop.f32.mrf.mxu2 }
 0x178   : > { %v708_v48 = vpop.f32.mrf.mxu3 }
 0x179   : > { %v709_v49 = vadd.f32 %v708_v48, %v643_v32 }
 0x17b   : > { %v1190_v51 = vpop.eup %1189  ;;  %v805_v52 = vadd.f32 %v1730_v24, %v709_v49 }
 0x17c   : > { %v836_v53 = vadd.f32 %v1190_v51, %v1622_v34 }
 0x17d   : > { %1191 = vtanh.f32 %v805_v52 }
 0x17e   : > { %852 = vst [vmem:[%s1737_s3 + $0x10] sm:$0xff] %v836_v53 }
 0x17f   : > { %v646_v54 = vpop.f32.mrf.mxu2 }
 0x180   : > { %v711_v55 = vpop.f32.mrf.mxu3 }
 0x181   : > { %v712_v56 = vadd.f32 %v711_v55, %v646_v54 }
 0x183   : > { %v1192_v57 = vpop.eup %1191  ;;  %v806_v33 = vadd.f32 %v1730_v24, %v712_v56 }
 0x184   : > { %v837_v58 = vadd.f32 %v1192_v57, %v1627_v35 }
 0x185   : > { %1193 = vtanh.f32 %v806_v33 }
 0x186   : > { %853 = vst [vmem:[%s1737_s3 + $0x18] sm:$0xff] %v837_v58 }
 0x187   : > { %v649_v60 = vpop.f32.mrf.mxu2 }
 0x188   : > { %v714_v61 = vpop.f32.mrf.mxu3 }
 0x189   : > { %v715_v62 = vadd.f32 %v714_v61, %v649_v60 }
 0x18b   : > { %v1194_v63 = vpop.eup %1193  ;;  %v807_v34 = vadd.f32 %v1730_v24, %v715_v62 }
 0x18c   : > { %v838_v0 = vadd.f32 %v1194_v63, %v1632_v36 }
 0x18d   : > { %1195 = vtanh.f32 %v807_v34 }
 0x18e   : > { %854 = vst [vmem:[%s1737_s3 + $0x20] sm:$0xff] %v838_v0 }
 0x18f   : > { %v652_v1 = vpop.f32.mrf.mxu2 }
 0x190   : > { %v717_v3 = vpop.f32.mrf.mxu3 }
 0x191   : > { %v718_v4 = vadd.f32 %v717_v3, %v652_v1 }
 0x193   : > { %v1196_v5 = vpop.eup %1195  ;;  %v808_v35 = vadd.f32 %v1730_v24, %v718_v4 }
 0x194   : > { %v839_v6 = vadd.f32 %v1196_v5, %v1637_v37 }
 0x195   : > { %1197 = vtanh.f32 %v808_v35 }
 0x196   : > { %855 = vst [vmem:[%s1737_s3 + $0x28] sm:$0xff] %v839_v6 }
 0x197   : > { %v655_v7 = vpop.f32.mrf.mxu2 }
 0x198   : > { %v720_v8 = vpop.f32.mrf.mxu3 }
 0x199   : > { %v721_v9 = vadd.f32 %v720_v8, %v655_v7 }
 0x19b   : > { %v1198_v10 = vpop.eup %1197  ;;  %v809_v36 = vadd.f32 %v1730_v24, %v721_v9 }
 0x19c   : > { %v840_v12 = vadd.f32 %v1198_v10, %v1642_v38 }
 0x19d   : > { %1199 = vtanh.f32 %v809_v36 }
 0x19e   : > { %856 = vst [vmem:[%s1737_s3 + $0x30] sm:$0xff] %v840_v12 }
 0x19f   : > { %v658_v13 = vpop.f32.mrf.mxu2 }
 0x1a0   : > { %v723_v16 = vpop.f32.mrf.mxu3 }
 0x1a1   : > { %v724_v19 = vadd.f32 %v723_v16, %v658_v13 }
 0x1a3   : > { %v1200_v20 = vpop.eup %1199  ;;  %v810_v37 = vadd.f32 %v1730_v24, %v724_v19 }
 0x1a4   : > { %v841_v21 = vadd.f32 %v1200_v20, %v1647_v39 }
 0x1a5   : > { %1201 = vtanh.f32 %v810_v37 }
 0x1a6   : > { %857 = vst [vmem:[%s1737_s3 + $0x38] sm:$0xff] %v841_v21 }
 0x1a7   : > { %v661_v22 = vpop.f32.mrf.mxu2 }
 0x1a8   : > { %v726_v23 = vpop.f32.mrf.mxu3 }
 0x1a9   : > { %v727_v25 = vadd.f32 %v726_v23, %v661_v22 }
 0x1ab   : > { %v1202_v17 = vpop.eup %1201  ;;  %v811_v38 = vadd.f32 %v1730_v24, %v727_v25 }
 0x1ac   : > { %v842_v18 = vadd.f32 %v1202_v17, %v1652_v40 }
 0x1ad   : > { %1203 = vtanh.f32 %v811_v38 }
 0x1ae   : > { %858 = vst [vmem:[%s1737_s3 + $0x40] sm:$0xff] %v842_v18 }
 0x1af   : > { %v664_v26 = vpop.f32.mrf.mxu2 }
 0x1b0   : > { %v729_v27 = vpop.f32.mrf.mxu3 }
 0x1b1   : > { %v730_v28 = vadd.f32 %v729_v27, %v664_v26 }
 0x1b3   : > { %v1204_v29 = vpop.eup %1203  ;;  %v812_v39 = vadd.f32 %v1730_v24, %v730_v28 }
 0x1b4   : > { %v843_v30 = vadd.f32 %v1204_v29, %v1657_v41 }
 0x1b5   : > { %1205 = vtanh.f32 %v812_v39 }
 0x1b6   : > { %859 = vst [vmem:[%s1737_s3 + $0x48] sm:$0xff] %v843_v30 }
 0x1b7   : > { %v667_v31 = vpop.f32.mrf.mxu2 }
 0x1b8   : > { %v732_v42 = vpop.f32.mrf.mxu3 }
 0x1b9   : > { %v733_v43 = vadd.f32 %v732_v42, %v667_v31 }
 0x1bb   : > { %v1206_v44 = vpop.eup %1205  ;;  %v813_v40 = vadd.f32 %v1730_v24, %v733_v43 }
 0x1bc   : > { %v844_v45 = vadd.f32 %v1206_v44, %v1662_v50 }
 0x1bd   : > { %1207 = vtanh.f32 %v813_v40 }
 0x1be   : > { %860 = vst [vmem:[%s1737_s3 + $0x50] sm:$0xff] %v844_v45 }
 0x1bf   : > { %v670_v46 = vpop.f32.mrf.mxu2 }
 0x1c0   : > { %v735_v47 = vpop.f32.mrf.mxu3 }
 0x1c1   : > { %v736_v32 = vadd.f32 %v735_v47, %v670_v46 }
 0x1c3   : > { %v1208_v48 = vpop.eup %1207  ;;  %v814_v41 = vadd.f32 %v1730_v24, %v736_v32 }
 0x1c4   : > { %v845_v49 = vadd.f32 %v1208_v48, %v1667_v59 }
 0x1c5   : > { %1209 = vtanh.f32 %v814_v41 }
 0x1c6   : > { %861 = vst [vmem:[%s1737_s3 + $0x58] sm:$0xff] %v845_v49 }
 0x1c7   : > { %v673_v51 = vpop.f32.mrf.mxu2 }
 0x1c8   : > { %v738_v52 = vpop.f32.mrf.mxu3 }
 0x1c9   : > { %v739_v53 = vadd.f32 %v738_v52, %v673_v51 }
 0x1cb   : > { %v1210_v54 = vpop.eup %1209  ;;  %v815_v50 = vadd.f32 %v1730_v24, %v739_v53 }
 0x1cc   : > { %v846_v55 = vadd.f32 %v1210_v54, %v1672_v2 }
 0x1cd   : > { %1211 = vtanh.f32 %v815_v50 }
 0x1ce   : > { %862 = vst [vmem:[%s1737_s3 + $0x60] sm:$0xff] %v846_v55 }
 0x1cf   : > { %v676_v56 = vpop.f32.mrf.mxu2 }
 0x1d0   : > { %v741_v57 = vpop.f32.mrf.mxu3 }
 0x1d1   : > { %v742_v33 = vadd.f32 %v741_v57, %v676_v56 }
 0x1d3   : > { %v1212_v59 = vpop.eup %1211  ;;  %v816_v58 = vadd.f32 %v1730_v24, %v742_v33 }
 0x1d4   : > { %v847_v60 = vadd.f32 %v1212_v59, %v1677_v11 }
 0x1d5   : > { %1213 = vtanh.f32 %v816_v58 }
 0x1d6   : > { %863 = vst [vmem:[%s1737_s3 + $0x68] sm:$0xff] %v847_v60 }
 0x1d7   : > { %v679_v61 = vpop.f32.mrf.mxu2 }
 0x1d8   : > { %v744_v62 = vpop.f32.mrf.mxu3 }
 0x1d9   : > { %v745_v63 = vadd.f32 %v744_v62, %v679_v61 }
 0x1db   : > { %v1214_v2 = vpop.eup %1213  ;;  %v817_v34 = vadd.f32 %v1730_v24, %v745_v63 }
 0x1dc   : > { %v848_v0 = vadd.f32 %v1214_v2, %v1682_v14 }
 0x1dd   : > { %1215 = vtanh.f32 %v817_v34 }
 0x1de   : > { %864 = vst [vmem:[%s1737_s3 + $0x70] sm:$0xff] %v848_v0 }
 0x1e3   : > { %v1216_v11 = vpop.eup %1215 }
 0x1e4   : > { %v849_v1 = vadd.f32 %v1216_v11, %v1687_v15 }
 0x1e6   : > { %865 = vst [vmem:[%s1737_s3 + $0x78] sm:$0xff] %v849_v1 }
 0x1e7   : > { %1364 = shalt.err (!%p1361_p0)
}
 0x1e8   : > { %s1436_s10 = smov 128   ;;  %s1437_s11 = smov 8  }
 0x1e9   : > { %1035 = dma.vmem_to_hbm [thread:$0]  (%p1560_p3), %s880_s7, 2048, %s882_s16, %s867_s21, %s1436_s10, %s1436_s10, %s1437_s11  }
 0x1ea PF: > { %s896_s1 = sand.u32 1, %s1407_s18   ;;  %p1052_p5 = pnand %p1004_p11, %p1517_p6 }
 0x1eb   : > { %s897_s2 = scalar_lea.sflag [#allocation5], %s896_s1 }
 0x1ec   : > { %p1053_p7 = pneg %p1052_p5 }
 0x1ee   : > { %1402 = dma.done.wait (%p1053_p7), %s897_s2, 2048  }
 0x1ef   : > { %1404 = vsyncadd (%p1053_p7), %s897_s2, 4294965248  ;;  %s23_s23 = sadd.s32 1, %s1427_s23   ;;  %s1847_s18 = smov %s1411_s19 }
 0x1f0   : > { %p20_p9 = scmp.ge.s32.totalorder %s23_s23, 4   ;;  %s1848_s19 = smov %s1415_s20 }
 0x1f1   : > { %s1849_s20 = smov %s1576_s27  ;;  %s1850_s21 = smov %s1423_s22 }
 0x1f2   : > { %s1851_s22 = smov %s1853_s15  ;;  %22 = sbr.rel (!%p20_p9) target bundleno = 12 (0xc), region = 108 }
 0x1f7   :  { %903 = vsyncpa [#allocation4], 1 }
 0x1f8   :  { %905 = vsyncpa [#allocation4 + $0x1], 1 }
 0x1f9   :  { %906 = vsyncpa [#allocation7], 1 }
 0x1fa   :  { %907 = vsyncpa [#allocation10], 1 }
 0x1fb   :  { %908 = vsyncpa [#allocation5], 1 }
 0x1fc   :  { %910 = vsyncpa [#allocation5 + $0x1], 1 }

</bundles_post_ra>
